<compile_context>
chip_gen: v6e
topology: v6e:2x2x1
jax: 0.10.0
libtpu: 0.0.40
codegen_flags: <defaults>
</compile_context>

<pallas_src>
import functools
import math

import jax
import jax.numpy as jnp
from jax.experimental import pallas as pl
from jax.experimental.pallas import tpu as pltpu


# Row layout of the packed (13 + T + t_nhead + s_nhead, D) vector slab.
#   0..5  : TAttention ln1_g, ln1_b, ln2_g, ln2_b, ffn_b1, ffn_b2
#   6..11 : SAttention ln1_g, ln1_b, ln2_g, ln2_b, ffn_b1, ffn_b2
#   12    : input-projection bias
#   13..13+T-1            : positional encoding rows
#   13+T..13+T+t_nhead-1  : TAttention per-head column masks (0/1)
#   ...   + s_nhead       : SAttention per-head column masks (0/1)
_IN_B_ROW = 12
_PE_ROW = 13


def positional_encoding(T, D):
    pos = jnp.arange(T, dtype=jnp.float32)[:, None]
    div = jnp.exp(jnp.arange(0, D, 2, dtype=jnp.float32) * (-math.log(10000.0) / D))
    pe = jnp.zeros((T, D), jnp.float32)
    pe = pe.at[:, 0::2].set(jnp.sin(pos * div))
    pe = pe.at[:, 1::2].set(jnp.cos(pos * div))
    return pe


def _head_slices(D, nhead):
    """(lo, hi) per head, matching the module's 'last head takes the rest'."""
    hd = D // nhead
    out = []
    for h in range(nhead):
        lo = h * hd
        hi = D if h == nhead - 1 else lo + hd
        out.append((lo, hi))
    return out


def _ppnet_kernel(src_ref, gate_ref, fvec_ref, wg_ref, win_ref, dvec_ref,
                  abias_ref, qkv_ref, w_ref, wout_ref, bout_ref,
                  o_ref,
                  *, B, T, F, D, P, t_nhead, s_nhead, beta, eps):
    f32 = jnp.float32
    bf16 = jnp.bfloat16
    BT = B * T

    def mm(a, w):
        # Plain NN matmul on the MXU: bf16 operands, f32 accumulation.
        return jnp.dot(a, w, preferred_element_type=f32)

    def mm_nt(a, b):
        # a @ b.T without materializing a transpose (contract last dims).
        return jax.lax.dot_general(a, b, (((1,), (1,)), ((), ())),
                                   preferred_element_type=f32)

    def ln(x, g, b):
        mu = jnp.mean(x, axis=-1, keepdims=True)
        var = jnp.mean((x - mu) * (x - mu), axis=-1, keepdims=True)
        return (x - mu) * jax.lax.rsqrt(var + eps) * g + b

    def softmax_last(s):
        s = s - jnp.max(s, axis=-1, keepdims=True)
        p = jnp.exp(s)
        return p * pl.reciprocal(jnp.sum(p, axis=-1, keepdims=True), approx=True)

    # Hoist the packed side inputs once.
    vecs = dvec_ref[...]                                  # (13+T+Ht+Hs, D) f32
    fvec = fvec_ref[...]                                  # (3, F) f32
    abias = abias_ref[...]                                # (2, BT, BT) f32

    def vrow(i):
        return vecs[i:i + 1, :]                           # (1, D)

    ta_mask_row = _PE_ROW + T
    sa_mask_row = ta_mask_row + t_nhead

    # ---------------- RevIN (norm mode over time; see TODO above) ----------
    src = src_ref[...]                                    # (B, T, F) f32
    mu = jnp.mean(src, axis=1, keepdims=True)
    var = jnp.mean((src - mu) * (src - mu), axis=1, keepdims=True)
    src_n = (src - mu) * jax.lax.rsqrt(var + eps)
    src_n = src_n * fvec[0:1].reshape(1, 1, F) + fvec[1:2].reshape(1, 1, F)

    # ---------------- feature Gate ----------------------------------------
    g_lin = mm(gate_ref[...].astype(bf16), wg_ref[...]) + fvec[2:3]   # (B, F)
    gate = softmax_last(g_lin * (1.0 / beta)) * float(F)              # (B, F)
    xg = src_n * gate.reshape(B, 1, F)                                # (B, T, F)

    # ---------------- input projection + positional encoding --------------
    z = mm(xg.reshape(BT, F).astype(bf16), win_ref[...]) + vrow(_IN_B_ROW)
    pe = vecs[_PE_ROW:_PE_ROW + T, :]                                 # (T, D)
    z = (z.reshape(B, T, D) + pe.reshape(1, T, D)).reshape(BT, D)

    # ---------------- shared attention block (rows stay in (b,t) order) ----
    def attention_block(x_in, qkv_w, ffn_w1, ffn_w2, vec_off, mask_row,
                        nhead, inv_temp, bias):
        g1, b1 = vrow(vec_off + 0), vrow(vec_off + 1)
        g2, b2 = vrow(vec_off + 2), vrow(vec_off + 3)
        fb1, fb2 = vrow(vec_off + 4), vrow(vec_off + 5)

        x1 = ln(x_in, g1, b1)                             # (BT, D) f32
        x1b = x1.astype(bf16)                             # cast once, reuse
        qkvb = mm(x1b, qkv_w).astype(bf16)                # fused QKV (BT, 3D)
        vb = qkvb[:, 2 * D:3 * D]                         # (BT, D) bf16

        att = jnp.zeros((BT, D), f32)
        for h, (lo, hi) in enumerate(_head_slices(D, nhead)):
            qh = qkvb[:, lo:hi]
            kh = qkvb[:, D + lo:D + hi]
            s = mm_nt(qh, kh)                             # (BT, BT) f32
            if inv_temp != 1.0:
                s = s * inv_temp
            # Additive bias keeps only same-batch (TAttention) / same-timestep
            # (SAttention) entries; masked entries underflow to exactly 0.
            p = softmax_last(s + bias).astype(bf16)
            # Full-width PV matmul + constant per-head column mask: lane-dense,
            # no narrow stores, no unaligned concatenation.
            att = att + mm(p, vb) * vrow(mask_row + h)

        xt = ln(x1 + att, g2, b2)                         # residual: post-norm1 x
        xtb = xt.astype(bf16)
        h1 = jnp.maximum(mm(xtb, ffn_w1) + fb1, 0.0)
        return xt + mm(h1.astype(bf16), ffn_w2) + fb2     # (BT, D) f32

    # TAttention: attend over time within a batch (temperature = 1, as module).
    y_t = attention_block(z, qkv_ref[0], w_ref[0], w_ref[1],
                          vec_off=0, mask_row=ta_mask_row, nhead=t_nhead,
                          inv_temp=1.0, bias=abias[0])
    # SAttention: attend over the batch within a timestep.
    y_s = attention_block(y_t, qkv_ref[1], w_ref[2], w_ref[3],
                          vec_off=6, mask_row=sa_mask_row, nhead=s_nhead,
                          inv_temp=1.0 / math.sqrt(D / s_nhead), bias=abias[1])

    # ---------------- TemporalAttention + prediction head -----------------
    ht = mm(y_s.astype(bf16), w_ref[4])                   # (BT, D) f32
    h3 = ht.reshape(B, T, D)
    y3 = y_s.reshape(B, T, D)
    lam = jnp.sum(h3 * h3[:, T - 1:T, :], axis=-1)        # (B, T)
    lam = softmax_last(lam)
    pooled = jnp.sum(lam.reshape(B, T, 1) * y3, axis=1)   # (B, D)
    out = mm(pooled.astype(bf16), wout_ref[...]) + bout_ref[...]      # (B, P)
    o_ref[...] = out.astype(o_ref.dtype)


def ppnet_forward(x, params, *, d_feat, d_model, t_nhead, s_nhead,
                  gate_start, gate_end, pred_len, beta):
    B, T, _ = x.shape
    F, D, P = d_feat, d_model, pred_len
    BT = B * T
    bf16, f32 = jnp.bfloat16, jnp.float32

    # ---- layout plumbing in the wrapper (free): slice, pre-transpose, pack ----
    src = x[:, :, 6:gate_start]                           # (B, T, F)
    gate_in = x[:, -1, gate_start:gate_end]               # (B, G)
    pe = positional_encoding(T, D)

    ta, sa = params["tatt"], params["satt"]
    # Fused QKV weights, pre-transposed to (in, out): (2, D, 3D) bf16.
    qkv_stack = jnp.stack([
        jnp.concatenate([ta["wq"].T, ta["wk"].T, ta["wv"].T], axis=1),
        jnp.concatenate([sa["wq"].T, sa["wk"].T, sa["wv"].T], axis=1),
    ]).astype(bf16)
    # Remaining (D, D) weights: TA ffn1/ffn2, SA ffn1/ffn2, temporal.
    w_stack = jnp.stack([
        ta["ffn_w1"].T, ta["ffn_w2"].T, sa["ffn_w1"].T, sa["ffn_w2"].T,
        params["temp_w"].T,
    ]).astype(bf16)                                       # (5, D, D)

    def head_masks(nhead):
        col = jnp.arange(D)
        rows = []
        for lo, hi in _head_slices(D, nhead):
            rows.append(jnp.where((col >= lo) & (col < hi), 1.0, 0.0))
        return jnp.stack(rows).astype(f32)                # (nhead, D)

    dvec = jnp.concatenate([
        jnp.stack([ta["ln1_g"], ta["ln1_b"], ta["ln2_g"], ta["ln2_b"],
                   ta["ffn_b1"], ta["ffn_b2"],
                   sa["ln1_g"], sa["ln1_b"], sa["ln2_g"], sa["ln2_b"],
                   sa["ffn_b1"], sa["ffn_b2"],
                   params["in_b"]]).astype(f32),          # rows 0..12
        pe,                                               # rows 13..13+T-1
        head_masks(t_nhead),                              # TA column masks
        head_masks(s_nhead),                              # SA column masks
    ], axis=0)                                            # (13+T+Ht+Hs, D) f32

    fvec = jnp.stack([params["revin_w"], params["revin_b"],
                      params["gate_b"]]).astype(f32)      # (3, F)

    # Additive score biases: 0 inside the allowed block, -1e30 outside.
    bi = jnp.arange(BT) // T                              # batch index of row
    ti = jnp.arange(BT) % T                               # time index of row
    neg = jnp.float32(-1e30)
    abias = jnp.stack([
        jnp.where(bi[:, None] == bi[None, :], 0.0, neg),  # TAttention: same batch
        jnp.where(ti[:, None] == ti[None, :], 0.0, neg),  # SAttention: same step
    ]).astype(f32)                                        # (2, BT, BT)

    wg = params["gate_w"].T.astype(bf16)                  # (G, F)
    win = params["in_w"].T.astype(bf16)                   # (F, D)
    wout = params["out_w"].T.astype(bf16)                 # (D, P)
    bout = params["out_b"].reshape(1, P).astype(f32)

    kernel = functools.partial(
        _ppnet_kernel, B=B, T=T, F=F, D=D, P=P,
        t_nhead=t_nhead, s_nhead=s_nhead, beta=float(beta), eps=1e-5)

    vmem_spec = pl.BlockSpec(memory_space=pltpu.MemorySpace.VMEM)
    return pl.pallas_call(
        kernel,
        out_shape=jax.ShapeDtypeStruct((B, P), jnp.float32),
        in_specs=[vmem_spec] * 11,
        out_specs=vmem_spec,
        # Small model: fully VMEM-resident, gridless.  When scaling B*T, raise
        # this toward ~100 MiB on v5e/v6e (128 MiB VMEM) but keep <=48 MiB on
        # v7x (64 MiB VMEM).
        compiler_params=pltpu.CompilerParams(vmem_limit_bytes=32 * 1024 * 1024),
    )(src, gate_in, fvec, wg, win, dvec, abias, qkv_stack, w_stack, wout, bout)


def ppnet_reference(x, params, *, d_feat, d_model, t_nhead, s_nhead,
                    gate_start, gate_end, pred_len, beta, eps=1e-5):
    """Pure-JAX reference mirroring the PyTorch forward (dropout=identity).

    Uses the same precision policy as the kernel (bf16 MXU operands, f32
    accumulation, f32 element-wise math) so the comparison isolates kernel
    bugs rather than bf16 rounding.
    """
    f32, bf16 = jnp.float32, jnp.bfloat16
    B, T, _ = x.shape
    F, D = d_feat, d_model

    def lin(a, w, b=None):   # torch Linear: a @ w.T (+ b)
        y = jnp.einsum("...i,oi->...o", a.astype(bf16), w.astype(bf16),
                       preferred_element_type=f32)
        return y if b is None else y + b

    def ln(xx, g, b):
        mu = jnp.mean(xx, axis=-1, keepdims=True)
        var = jnp.mean((xx - mu) ** 2, axis=-1, keepdims=True)
        return (xx - mu) * jax.lax.rsqrt(var + eps) * g + b

    def softmax(s, axis=-1):
        s = s - jnp.max(s, axis=axis, keepdims=True)
        p = jnp.exp(s)
        return p / jnp.sum(p, axis=axis, keepdims=True)

    src = x[:, :, 6:gate_start]
    gate_in = x[:, -1, gate_start:gate_end]

    # RevIN (norm mode, standard)
    mu = jnp.mean(src, axis=1, keepdims=True)
    var = jnp.mean((src - mu) ** 2, axis=1, keepdims=True)
    src_n = (src - mu) * jax.lax.rsqrt(var + eps) * params["revin_w"] + params["revin_b"]

    # Gate
    g = lin(gate_in, params["gate_w"], params["gate_b"])
    g = softmax(g / beta) * F
    xg = src_n * g[:, None, :]

    # Input projection + positional encoding
    z = lin(xg, params["in_w"], params["in_b"]) + positional_encoding(T, D)[None, :, :]

    def attention_block(xx, prm, nhead, temperature, over_batch):
        x1 = ln(xx, prm["ln1_g"], prm["ln1_b"])
        q, k, v = lin(x1, prm["wq"]), lin(x1, prm["wk"]), lin(x1, prm["wv"])
        if over_batch:                                    # SAttention: attend over batch
            q, k, v = (jnp.swapaxes(a, 0, 1) for a in (q, k, v))
        outs = []
        for lo, hi in _head_slices(D, nhead):
            qh, kh, vh = q[..., lo:hi], k[..., lo:hi], v[..., lo:hi]
            s = jnp.einsum("xtd,xsd->xts", qh.astype(bf16), kh.astype(bf16),
                           preferred_element_type=f32) / temperature
            p = softmax(s)
            outs.append(jnp.einsum("xts,xsd->xtd", p.astype(bf16), vh.astype(bf16),
                                   preferred_element_type=f32))
        att = jnp.concatenate(outs, axis=-1)
        if over_batch:
            att = jnp.swapaxes(att, 0, 1)
        xt = ln(x1 + att, prm["ln2_g"], prm["ln2_b"])
        ffn = lin(jnp.maximum(lin(xt, prm["ffn_w1"], prm["ffn_b1"]), 0.0),
                  prm["ffn_w2"], prm["ffn_b2"])
        return xt + ffn

    y = attention_block(z, params["tatt"], t_nhead, 1.0, over_batch=False)
    y = attention_block(y, params["satt"], s_nhead, math.sqrt(D / s_nhead), over_batch=True)

    # TemporalAttention
    h = lin(y, params["temp_w"])
    lam = jnp.einsum("btd,bd->bt", h, h[:, -1, :])
    lam = softmax(lam, axis=-1)
    pooled = jnp.einsum("bt,btd->bd", lam, y)
    return lin(pooled, params["out_w"], params["out_b"])


def init_params(key, *, d_feat, d_gate, d_model, pred_len):
    F, G, D, P = d_feat, d_gate, d_model, pred_len
    keys = iter(jax.random.split(key, 24))

    def w(shape, fan_in):
        return jax.random.normal(next(keys), shape, jnp.float32) / math.sqrt(fan_in)

    def attn_params():
        return {
            "wq": w((D, D), D), "wk": w((D, D), D), "wv": w((D, D), D),
            "ln1_g": jnp.ones((D,), jnp.float32), "ln1_b": jnp.zeros((D,), jnp.float32),
            "ln2_g": jnp.ones((D,), jnp.float32), "ln2_b": jnp.zeros((D,), jnp.float32),
            "ffn_w1": w((D, D), D), "ffn_b1": jnp.zeros((D,), jnp.float32),
            "ffn_w2": w((D, D), D), "ffn_b2": jnp.zeros((D,), jnp.float32),
        }

    return {
        "revin_w": jnp.ones((F,), jnp.float32),
        "revin_b": jnp.zeros((F,), jnp.float32),
        "gate_w": w((F, G), G), "gate_b": jnp.zeros((F,), jnp.float32),
        "in_w": w((D, F), F), "in_b": jnp.zeros((D,), jnp.float32),
        "tatt": attn_params(),
        "satt": attn_params(),
        "temp_w": w((D, D), D),
        "out_w": w((P, D), D), "out_b": jnp.zeros((P,), jnp.float32),
    }


if __name__ == "__main__":
    B, T = 4, 8
    D_FEAT, D_GATE = 16, 8
    GATE_START = 6 + D_FEAT                 # 22
    GATE_END = GATE_START + D_GATE          # 30
    D_MODEL, T_NHEAD, S_NHEAD = 32, 4, 2
    PRED_LEN, BETA = 4, 2.0

    key = jax.random.PRNGKey(0)
    kx, kp = jax.random.split(key)
    x = jax.random.normal(kx, (B, T, GATE_END), jnp.float32)
    params = init_params(kp, d_feat=D_FEAT, d_gate=D_GATE,
                         d_model=D_MODEL, pred_len=PRED_LEN)

    out = ppnet_forward(x, params, d_feat=D_FEAT, d_model=D_MODEL,
                        t_nhead=T_NHEAD, s_nhead=S_NHEAD,
                        gate_start=GATE_START, gate_end=GATE_END,
                        pred_len=PRED_LEN, beta=BETA)
    out = jax.block_until_ready(out)

    ref = ppnet_reference(x, params, d_feat=D_FEAT, d_model=D_MODEL,
                          t_nhead=T_NHEAD, s_nhead=S_NHEAD,
                          gate_start=GATE_START, gate_end=GATE_END,
                          pred_len=PRED_LEN, beta=BETA)

    assert out.shape == (B, PRED_LEN)
    max_err = float(jnp.max(jnp.abs(out - ref)))
    assert jnp.allclose(out, ref, atol=2e-2, rtol=2e-2), f"mismatch vs reference: {max_err}"

    print("KERNEL_OK")
</pallas_src>

<mosaic_0001>
module attributes {stable_mosaic.version = 11 : i64} {
  func.func @_ppnet_kernel(%arg0: memref<4x8x16xf32, #tpu.memory_space<vmem>>, %arg1: memref<4x8xf32, #tpu.memory_space<vmem>>, %arg2: memref<3x16xf32, #tpu.memory_space<vmem>>, %arg3: memref<8x16xbf16, #tpu.memory_space<vmem>>, %arg4: memref<16x32xbf16, #tpu.memory_space<vmem>>, %arg5: memref<27x32xf32, #tpu.memory_space<vmem>>, %arg6: memref<2x32x32xf32, #tpu.memory_space<vmem>>, %arg7: memref<2x32x96xbf16, #tpu.memory_space<vmem>>, %arg8: memref<5x32x32xbf16, #tpu.memory_space<vmem>>, %arg9: memref<32x4xbf16, #tpu.memory_space<vmem>>, %arg10: memref<1x4xf32, #tpu.memory_space<vmem>>, %arg11: memref<4x4xf32, #tpu.memory_space<vmem>>) attributes {dimension_semantics = [], scalar_prefetch = 0 : i64, scratch_operands = 0 : i64, tpu.core_type = #tpu.core_type<tc>} {
    %c0 = arith.constant 0 : index
    %c0_0 = arith.constant 0 : index
    %0 = vector.load %arg5[%c0, %c0_0] : memref<27x32xf32, #tpu.memory_space<vmem>>, vector<27x32xf32>
    %c0_1 = arith.constant 0 : index
    %c0_2 = arith.constant 0 : index
    %1 = vector.load %arg2[%c0_1, %c0_2] : memref<3x16xf32, #tpu.memory_space<vmem>>, vector<3x16xf32>
    %c0_3 = arith.constant 0 : index
    %c0_4 = arith.constant 0 : index
    %c0_5 = arith.constant 0 : index
    %2 = vector.load %arg6[%c0_3, %c0_4, %c0_5] : memref<2x32x32xf32, #tpu.memory_space<vmem>>, vector<2x32x32xf32>
    %c0_6 = arith.constant 0 : index
    %c0_7 = arith.constant 0 : index
    %c0_8 = arith.constant 0 : index
    %3 = vector.load %arg0[%c0_6, %c0_7, %c0_8] : memref<4x8x16xf32, #tpu.memory_space<vmem>>, vector<4x8x16xf32>
    %cst = arith.constant dense<0.000000e+00> : vector<4x16xf32>
    %4 = vector.multi_reduction <add>, %3, %cst [1] : vector<4x8x16xf32> to vector<4x16xf32>
    %5 = vector.shape_cast %4 : vector<4x16xf32> to vector<4x1x16xf32>
    %cst_9 = arith.constant 8.000000e+00 : f32
    %6 = vector.broadcast %cst_9 : f32 to vector<4x1x16xf32>
    %7 = arith.divf %5, %6 : vector<4x1x16xf32>
    %8 = vector.broadcast %7 : vector<4x1x16xf32> to vector<4x8x16xf32>
    %9 = arith.subf %3, %8 : vector<4x8x16xf32>
    %10 = vector.broadcast %7 : vector<4x1x16xf32> to vector<4x8x16xf32>
    %11 = arith.subf %3, %10 : vector<4x8x16xf32>
    %12 = arith.mulf %9, %11 : vector<4x8x16xf32>
    %cst_10 = arith.constant dense<0.000000e+00> : vector<4x16xf32>
    %13 = vector.multi_reduction <add>, %12, %cst_10 [1] : vector<4x8x16xf32> to vector<4x16xf32>
    %14 = vector.shape_cast %13 : vector<4x16xf32> to vector<4x1x16xf32>
    %cst_11 = arith.constant 8.000000e+00 : f32
    %15 = vector.broadcast %cst_11 : f32 to vector<4x1x16xf32>
    %16 = arith.divf %14, %15 : vector<4x1x16xf32>
    %17 = vector.broadcast %7 : vector<4x1x16xf32> to vector<4x8x16xf32>
    %18 = arith.subf %3, %17 : vector<4x8x16xf32>
    %cst_12 = arith.constant 9.99999974E-6 : f32
    %19 = vector.broadcast %cst_12 : f32 to vector<4x1x16xf32>
    %20 = arith.addf %16, %19 : vector<4x1x16xf32>
    %21 = math.rsqrt %20 : vector<4x1x16xf32>
    %22 = vector.broadcast %21 : vector<4x1x16xf32> to vector<4x8x16xf32>
    %23 = arith.mulf %18, %22 : vector<4x8x16xf32>
    %24 = vector.extract_strided_slice %1 {offsets = [0, 0], sizes = [1, 16], strides = [1, 1]} : vector<3x16xf32> to vector<1x16xf32>
    %25 = vector.shape_cast %24 : vector<1x16xf32> to vector<1x1x16xf32>
    %26 = vector.broadcast %25 : vector<1x1x16xf32> to vector<4x8x16xf32>
    %27 = arith.mulf %23, %26 : vector<4x8x16xf32>
    %28 = vector.extract_strided_slice %1 {offsets = [1, 0], sizes = [1, 16], strides = [1, 1]} : vector<3x16xf32> to vector<1x16xf32>
    %29 = vector.shape_cast %28 : vector<1x16xf32> to vector<1x1x16xf32>
    %30 = vector.broadcast %29 : vector<1x1x16xf32> to vector<4x8x16xf32>
    %31 = arith.addf %27, %30 : vector<4x8x16xf32>
    %c0_13 = arith.constant 0 : index
    %c0_14 = arith.constant 0 : index
    %32 = vector.load %arg1[%c0_13, %c0_14] : memref<4x8xf32, #tpu.memory_space<vmem>>, vector<4x8xf32>
    %33 = arith.truncf %32 : vector<4x8xf32> to vector<4x8xbf16>
    %c0_15 = arith.constant 0 : index
    %c0_16 = arith.constant 0 : index
    %34 = vector.load %arg3[%c0_15, %c0_16] : memref<8x16xbf16, #tpu.memory_space<vmem>>, vector<8x16xbf16>
    %cst_17 = arith.constant dense<0.000000e+00> : vector<4x16xf32>
    %35 = tpu.matmul %33, %34, %cst_17 {dimension_numbers = #tpu.dot_dimension_numbers<[1], [0], [0], [1], [0, 0, 1, 1], [], []>} : vector<4x8xbf16>, vector<8x16xbf16>, vector<4x16xf32> -> vector<4x16xf32>
    %36 = vector.extract_strided_slice %1 {offsets = [2, 0], sizes = [1, 16], strides = [1, 1]} : vector<3x16xf32> to vector<1x16xf32>
    %37 = vector.broadcast %36 : vector<1x16xf32> to vector<4x16xf32>
    %38 = arith.addf %35, %37 : vector<4x16xf32>
    %cst_18 = arith.constant 5.000000e-01 : f32
    %39 = vector.broadcast %cst_18 : f32 to vector<4x16xf32>
    %40 = arith.mulf %38, %39 : vector<4x16xf32>
    %cst_19 = arith.constant dense<0xFF800000> : vector<4xf32>
    %41 = vector.multi_reduction <maximumf>, %40, %cst_19 [1] : vector<4x16xf32> to vector<4xf32>
    %42 = vector.shape_cast %41 : vector<4xf32> to vector<4x1xf32>
    %43 = vector.broadcast %42 : vector<4x1xf32> to vector<4x16xf32>
    %44 = arith.subf %40, %43 : vector<4x16xf32>
    %45 = math.exp %44 : vector<4x16xf32>
    %cst_20 = arith.constant dense<0.000000e+00> : vector<4xf32>
    %46 = vector.multi_reduction <add>, %45, %cst_20 [1] : vector<4x16xf32> to vector<4xf32>
    %47 = vector.shape_cast %46 : vector<4xf32> to vector<4x1xf32>
    %48 = tpu.reciprocal %47 {approx = true} : vector<4x1xf32> -> vector<4x1xf32>
    %49 = vector.broadcast %48 : vector<4x1xf32> to vector<4x16xf32>
    %50 = arith.mulf %45, %49 : vector<4x16xf32>
    %cst_21 = arith.constant 1.600000e+01 : f32
    %51 = vector.broadcast %cst_21 : f32 to vector<4x16xf32>
    %52 = arith.mulf %50, %51 : vector<4x16xf32>
    %53 = vector.shape_cast %52 : vector<4x16xf32> to vector<4x1x16xf32>
    %54 = vector.broadcast %53 : vector<4x1x16xf32> to vector<4x8x16xf32>
    %55 = arith.mulf %31, %54 : vector<4x8x16xf32>
    %56 = vector.shape_cast %55 : vector<4x8x16xf32> to vector<32x16xf32>
    %57 = arith.truncf %56 : vector<32x16xf32> to vector<32x16xbf16>
    %c0_22 = arith.constant 0 : index
    %c0_23 = arith.constant 0 : index
    %58 = vector.load %arg4[%c0_22, %c0_23] : memref<16x32xbf16, #tpu.memory_space<vmem>>, vector<16x32xbf16>
    %cst_24 = arith.constant dense<0.000000e+00> : vector<32x32xf32>
    %59 = tpu.matmul %57, %58, %cst_24 {dimension_numbers = #tpu.dot_dimension_numbers<[1], [0], [0], [1], [0, 0, 1, 1], [], []>} : vector<32x16xbf16>, vector<16x32xbf16>, vector<32x32xf32> -> vector<32x32xf32>
    %60 = vector.extract_strided_slice %0 {offsets = [12, 0], sizes = [1, 32], strides = [1, 1]} : vector<27x32xf32> to vector<1x32xf32>
    %61 = vector.broadcast %60 : vector<1x32xf32> to vector<32x32xf32>
    %62 = arith.addf %59, %61 : vector<32x32xf32>
    %63 = vector.extract_strided_slice %0 {offsets = [13, 0], sizes = [8, 32], strides = [1, 1]} : vector<27x32xf32> to vector<8x32xf32>
    %64 = vector.shape_cast %62 : vector<32x32xf32> to vector<4x8x32xf32>
    %65 = vector.shape_cast %63 : vector<8x32xf32> to vector<1x8x32xf32>
    %66 = vector.broadcast %65 : vector<1x8x32xf32> to vector<4x8x32xf32>
    %67 = arith.addf %64, %66 : vector<4x8x32xf32>
    %68 = vector.shape_cast %67 : vector<4x8x32xf32> to vector<32x32xf32>
    %c0_25 = arith.constant 0 : index
    %c0_26 = arith.constant 0 : index
    %c0_27 = arith.constant 0 : index
    %69 = vector.load %arg7[%c0_25, %c0_26, %c0_27] : memref<2x32x96xbf16, #tpu.memory_space<vmem>>, vector<1x32x96xbf16>
    %70 = vector.shape_cast %69 : vector<1x32x96xbf16> to vector<32x96xbf16>
    %c0_28 = arith.constant 0 : index
    %c0_29 = arith.constant 0 : index
    %c0_30 = arith.constant 0 : index
    %71 = vector.load %arg8[%c0_28, %c0_29, %c0_30] : memref<5x32x32xbf16, #tpu.memory_space<vmem>>, vector<1x32x32xbf16>
    %72 = vector.shape_cast %71 : vector<1x32x32xbf16> to vector<32x32xbf16>
    %c1 = arith.constant 1 : index
    %c0_31 = arith.constant 0 : index
    %c0_32 = arith.constant 0 : index
    %73 = vector.load %arg8[%c1, %c0_31, %c0_32] : memref<5x32x32xbf16, #tpu.memory_space<vmem>>, vector<1x32x32xbf16>
    %74 = vector.shape_cast %73 : vector<1x32x32xbf16> to vector<32x32xbf16>
    %75 = vector.extract_strided_slice %2 {offsets = [0, 0, 0], sizes = [1, 32, 32], strides = [1, 1, 1]} : vector<2x32x32xf32> to vector<1x32x32xf32>
    %76 = vector.shape_cast %75 : vector<1x32x32xf32> to vector<32x32xf32>
    %77 = vector.extract_strided_slice %0 {offsets = [0, 0], sizes = [1, 32], strides = [1, 1]} : vector<27x32xf32> to vector<1x32xf32>
    %78 = vector.extract_strided_slice %0 {offsets = [1, 0], sizes = [1, 32], strides = [1, 1]} : vector<27x32xf32> to vector<1x32xf32>
    %79 = vector.extract_strided_slice %0 {offsets = [2, 0], sizes = [1, 32], strides = [1, 1]} : vector<27x32xf32> to vector<1x32xf32>
    %80 = vector.extract_strided_slice %0 {offsets = [3, 0], sizes = [1, 32], strides = [1, 1]} : vector<27x32xf32> to vector<1x32xf32>
    %81 = vector.extract_strided_slice %0 {offsets = [4, 0], sizes = [1, 32], strides = [1, 1]} : vector<27x32xf32> to vector<1x32xf32>
    %82 = vector.extract_strided_slice %0 {offsets = [5, 0], sizes = [1, 32], strides = [1, 1]} : vector<27x32xf32> to vector<1x32xf32>
    %cst_33 = arith.constant dense<0.000000e+00> : vector<32xf32>
    %83 = vector.multi_reduction <add>, %68, %cst_33 [1] : vector<32x32xf32> to vector<32xf32>
    %84 = vector.shape_cast %83 : vector<32xf32> to vector<32x1xf32>
    %cst_34 = arith.constant 3.200000e+01 : f32
    %85 = vector.broadcast %cst_34 : f32 to vector<32x1xf32>
    %86 = arith.divf %84, %85 : vector<32x1xf32>
    %87 = vector.broadcast %86 : vector<32x1xf32> to vector<32x32xf32>
    %88 = arith.subf %68, %87 : vector<32x32xf32>
    %89 = vector.broadcast %86 : vector<32x1xf32> to vector<32x32xf32>
    %90 = arith.subf %68, %89 : vector<32x32xf32>
    %91 = arith.mulf %88, %90 : vector<32x32xf32>
    %cst_35 = arith.constant dense<0.000000e+00> : vector<32xf32>
    %92 = vector.multi_reduction <add>, %91, %cst_35 [1] : vector<32x32xf32> to vector<32xf32>
    %93 = vector.shape_cast %92 : vector<32xf32> to vector<32x1xf32>
    %cst_36 = arith.constant 3.200000e+01 : f32
    %94 = vector.broadcast %cst_36 : f32 to vector<32x1xf32>
    %95 = arith.divf %93, %94 : vector<32x1xf32>
    %96 = vector.broadcast %86 : vector<32x1xf32> to vector<32x32xf32>
    %97 = arith.subf %68, %96 : vector<32x32xf32>
    %cst_37 = arith.constant 9.99999974E-6 : f32
    %98 = vector.broadcast %cst_37 : f32 to vector<32x1xf32>
    %99 = arith.addf %95, %98 : vector<32x1xf32>
    %100 = math.rsqrt %99 : vector<32x1xf32>
    %101 = vector.broadcast %100 : vector<32x1xf32> to vector<32x32xf32>
    %102 = arith.mulf %97, %101 : vector<32x32xf32>
    %103 = vector.broadcast %77 : vector<1x32xf32> to vector<32x32xf32>
    %104 = arith.mulf %102, %103 : vector<32x32xf32>
    %105 = vector.broadcast %78 : vector<1x32xf32> to vector<32x32xf32>
    %106 = arith.addf %104, %105 : vector<32x32xf32>
    %107 = arith.truncf %106 : vector<32x32xf32> to vector<32x32xbf16>
    %cst_38 = arith.constant dense<0.000000e+00> : vector<32x96xf32>
    %108 = tpu.matmul %107, %70, %cst_38 {dimension_numbers = #tpu.dot_dimension_numbers<[1], [0], [0], [1], [0, 0, 1, 1], [], []>} : vector<32x32xbf16>, vector<32x96xbf16>, vector<32x96xf32> -> vector<32x96xf32>
    %109 = arith.truncf %108 : vector<32x96xf32> to vector<32x96xbf16>
    %110 = vector.extract_strided_slice %109 {offsets = [0, 64], sizes = [32, 32], strides = [1, 1]} : vector<32x96xbf16> to vector<32x32xbf16>
    %cst_39 = arith.constant 0.000000e+00 : f32
    %111 = vector.broadcast %cst_39 : f32 to vector<32x32xf32>
    %112 = vector.extract_strided_slice %109 {offsets = [0, 0], sizes = [32, 8], strides = [1, 1]} : vector<32x96xbf16> to vector<32x8xbf16>
    %113 = vector.extract_strided_slice %109 {offsets = [0, 32], sizes = [32, 8], strides = [1, 1]} : vector<32x96xbf16> to vector<32x8xbf16>
    %cst_40 = arith.constant dense<0.000000e+00> : vector<32x32xf32>
    %114 = tpu.matmul %112, %113, %cst_40 {dimension_numbers = #tpu.dot_dimension_numbers<[1], [1], [0], [0], [0, 0, 1, 0], [], []>} : vector<32x8xbf16>, vector<32x8xbf16>, vector<32x32xf32> -> vector<32x32xf32>
    %115 = arith.addf %114, %76 : vector<32x32xf32>
    %cst_41 = arith.constant dense<0xFF800000> : vector<32xf32>
    %116 = vector.multi_reduction <maximumf>, %115, %cst_41 [1] : vector<32x32xf32> to vector<32xf32>
    %117 = vector.shape_cast %116 : vector<32xf32> to vector<32x1xf32>
    %118 = vector.broadcast %117 : vector<32x1xf32> to vector<32x32xf32>
    %119 = arith.subf %115, %118 : vector<32x32xf32>
    %120 = math.exp %119 : vector<32x32xf32>
    %cst_42 = arith.constant dense<0.000000e+00> : vector<32xf32>
    %121 = vector.multi_reduction <add>, %120, %cst_42 [1] : vector<32x32xf32> to vector<32xf32>
    %122 = vector.shape_cast %121 : vector<32xf32> to vector<32x1xf32>
    %123 = tpu.reciprocal %122 {approx = true} : vector<32x1xf32> -> vector<32x1xf32>
    %124 = vector.broadcast %123 : vector<32x1xf32> to vector<32x32xf32>
    %125 = arith.mulf %120, %124 : vector<32x32xf32>
    %126 = arith.truncf %125 : vector<32x32xf32> to vector<32x32xbf16>
    %cst_43 = arith.constant dense<0.000000e+00> : vector<32x32xf32>
    %127 = tpu.matmul %126, %110, %cst_43 {dimension_numbers = #tpu.dot_dimension_numbers<[1], [0], [0], [1], [0, 0, 1, 1], [], []>} : vector<32x32xbf16>, vector<32x32xbf16>, vector<32x32xf32> -> vector<32x32xf32>
    %128 = vector.extract_strided_slice %0 {offsets = [21, 0], sizes = [1, 32], strides = [1, 1]} : vector<27x32xf32> to vector<1x32xf32>
    %129 = vector.broadcast %128 : vector<1x32xf32> to vector<32x32xf32>
    %130 = arith.mulf %127, %129 : vector<32x32xf32>
    %131 = arith.addf %111, %130 : vector<32x32xf32>
    %132 = vector.extract_strided_slice %109 {offsets = [0, 8], sizes = [32, 8], strides = [1, 1]} : vector<32x96xbf16> to vector<32x8xbf16>
    %133 = vector.extract_strided_slice %109 {offsets = [0, 40], sizes = [32, 8], strides = [1, 1]} : vector<32x96xbf16> to vector<32x8xbf16>
    %cst_44 = arith.constant dense<0.000000e+00> : vector<32x32xf32>
    %134 = tpu.matmul %132, %133, %cst_44 {dimension_numbers = #tpu.dot_dimension_numbers<[1], [1], [0], [0], [0, 0, 1, 0], [], []>} : vector<32x8xbf16>, vector<32x8xbf16>, vector<32x32xf32> -> vector<32x32xf32>
    %135 = arith.addf %134, %76 : vector<32x32xf32>
    %cst_45 = arith.constant dense<0xFF800000> : vector<32xf32>
    %136 = vector.multi_reduction <maximumf>, %135, %cst_45 [1] : vector<32x32xf32> to vector<32xf32>
    %137 = vector.shape_cast %136 : vector<32xf32> to vector<32x1xf32>
    %138 = vector.broadcast %137 : vector<32x1xf32> to vector<32x32xf32>
    %139 = arith.subf %135, %138 : vector<32x32xf32>
    %140 = math.exp %139 : vector<32x32xf32>
    %cst_46 = arith.constant dense<0.000000e+00> : vector<32xf32>
    %141 = vector.multi_reduction <add>, %140, %cst_46 [1] : vector<32x32xf32> to vector<32xf32>
    %142 = vector.shape_cast %141 : vector<32xf32> to vector<32x1xf32>
    %143 = tpu.reciprocal %142 {approx = true} : vector<32x1xf32> -> vector<32x1xf32>
    %144 = vector.broadcast %143 : vector<32x1xf32> to vector<32x32xf32>
    %145 = arith.mulf %140, %144 : vector<32x32xf32>
    %146 = arith.truncf %145 : vector<32x32xf32> to vector<32x32xbf16>
    %cst_47 = arith.constant dense<0.000000e+00> : vector<32x32xf32>
    %147 = tpu.matmul %146, %110, %cst_47 {dimension_numbers = #tpu.dot_dimension_numbers<[1], [0], [0], [1], [0, 0, 1, 1], [], []>} : vector<32x32xbf16>, vector<32x32xbf16>, vector<32x32xf32> -> vector<32x32xf32>
    %148 = vector.extract_strided_slice %0 {offsets = [22, 0], sizes = [1, 32], strides = [1, 1]} : vector<27x32xf32> to vector<1x32xf32>
    %149 = vector.broadcast %148 : vector<1x32xf32> to vector<32x32xf32>
    %150 = arith.mulf %147, %149 : vector<32x32xf32>
    %151 = arith.addf %131, %150 : vector<32x32xf32>
    %152 = vector.extract_strided_slice %109 {offsets = [0, 16], sizes = [32, 8], strides = [1, 1]} : vector<32x96xbf16> to vector<32x8xbf16>
    %153 = vector.extract_strided_slice %109 {offsets = [0, 48], sizes = [32, 8], strides = [1, 1]} : vector<32x96xbf16> to vector<32x8xbf16>
    %cst_48 = arith.constant dense<0.000000e+00> : vector<32x32xf32>
    %154 = tpu.matmul %152, %153, %cst_48 {dimension_numbers = #tpu.dot_dimension_numbers<[1], [1], [0], [0], [0, 0, 1, 0], [], []>} : vector<32x8xbf16>, vector<32x8xbf16>, vector<32x32xf32> -> vector<32x32xf32>
    %155 = arith.addf %154, %76 : vector<32x32xf32>
    %cst_49 = arith.constant dense<0xFF800000> : vector<32xf32>
    %156 = vector.multi_reduction <maximumf>, %155, %cst_49 [1] : vector<32x32xf32> to vector<32xf32>
    %157 = vector.shape_cast %156 : vector<32xf32> to vector<32x1xf32>
    %158 = vector.broadcast %157 : vector<32x1xf32> to vector<32x32xf32>
    %159 = arith.subf %155, %158 : vector<32x32xf32>
    %160 = math.exp %159 : vector<32x32xf32>
    %cst_50 = arith.constant dense<0.000000e+00> : vector<32xf32>
    %161 = vector.multi_reduction <add>, %160, %cst_50 [1] : vector<32x32xf32> to vector<32xf32>
    %162 = vector.shape_cast %161 : vector<32xf32> to vector<32x1xf32>
    %163 = tpu.reciprocal %162 {approx = true} : vector<32x1xf32> -> vector<32x1xf32>
    %164 = vector.broadcast %163 : vector<32x1xf32> to vector<32x32xf32>
    %165 = arith.mulf %160, %164 : vector<32x32xf32>
    %166 = arith.truncf %165 : vector<32x32xf32> to vector<32x32xbf16>
    %cst_51 = arith.constant dense<0.000000e+00> : vector<32x32xf32>
    %167 = tpu.matmul %166, %110, %cst_51 {dimension_numbers = #tpu.dot_dimension_numbers<[1], [0], [0], [1], [0, 0, 1, 1], [], []>} : vector<32x32xbf16>, vector<32x32xbf16>, vector<32x32xf32> -> vector<32x32xf32>
    %168 = vector.extract_strided_slice %0 {offsets = [23, 0], sizes = [1, 32], strides = [1, 1]} : vector<27x32xf32> to vector<1x32xf32>
    %169 = vector.broadcast %168 : vector<1x32xf32> to vector<32x32xf32>
    %170 = arith.mulf %167, %169 : vector<32x32xf32>
    %171 = arith.addf %151, %170 : vector<32x32xf32>
    %172 = vector.extract_strided_slice %109 {offsets = [0, 24], sizes = [32, 8], strides = [1, 1]} : vector<32x96xbf16> to vector<32x8xbf16>
    %173 = vector.extract_strided_slice %109 {offsets = [0, 56], sizes = [32, 8], strides = [1, 1]} : vector<32x96xbf16> to vector<32x8xbf16>
    %cst_52 = arith.constant dense<0.000000e+00> : vector<32x32xf32>
    %174 = tpu.matmul %172, %173, %cst_52 {dimension_numbers = #tpu.dot_dimension_numbers<[1], [1], [0], [0], [0, 0, 1, 0], [], []>} : vector<32x8xbf16>, vector<32x8xbf16>, vector<32x32xf32> -> vector<32x32xf32>
    %175 = arith.addf %174, %76 : vector<32x32xf32>
    %cst_53 = arith.constant dense<0xFF800000> : vector<32xf32>
    %176 = vector.multi_reduction <maximumf>, %175, %cst_53 [1] : vector<32x32xf32> to vector<32xf32>
    %177 = vector.shape_cast %176 : vector<32xf32> to vector<32x1xf32>
    %178 = vector.broadcast %177 : vector<32x1xf32> to vector<32x32xf32>
    %179 = arith.subf %175, %178 : vector<32x32xf32>
    %180 = math.exp %179 : vector<32x32xf32>
    %cst_54 = arith.constant dense<0.000000e+00> : vector<32xf32>
    %181 = vector.multi_reduction <add>, %180, %cst_54 [1] : vector<32x32xf32> to vector<32xf32>
    %182 = vector.shape_cast %181 : vector<32xf32> to vector<32x1xf32>
    %183 = tpu.reciprocal %182 {approx = true} : vector<32x1xf32> -> vector<32x1xf32>
    %184 = vector.broadcast %183 : vector<32x1xf32> to vector<32x32xf32>
    %185 = arith.mulf %180, %184 : vector<32x32xf32>
    %186 = arith.truncf %185 : vector<32x32xf32> to vector<32x32xbf16>
    %cst_55 = arith.constant dense<0.000000e+00> : vector<32x32xf32>
    %187 = tpu.matmul %186, %110, %cst_55 {dimension_numbers = #tpu.dot_dimension_numbers<[1], [0], [0], [1], [0, 0, 1, 1], [], []>} : vector<32x32xbf16>, vector<32x32xbf16>, vector<32x32xf32> -> vector<32x32xf32>
    %188 = vector.extract_strided_slice %0 {offsets = [24, 0], sizes = [1, 32], strides = [1, 1]} : vector<27x32xf32> to vector<1x32xf32>
    %189 = vector.broadcast %188 : vector<1x32xf32> to vector<32x32xf32>
    %190 = arith.mulf %187, %189 : vector<32x32xf32>
    %191 = arith.addf %171, %190 : vector<32x32xf32>
    %192 = arith.addf %106, %191 : vector<32x32xf32>
    %cst_56 = arith.constant dense<0.000000e+00> : vector<32xf32>
    %193 = vector.multi_reduction <add>, %192, %cst_56 [1] : vector<32x32xf32> to vector<32xf32>
    %194 = vector.shape_cast %193 : vector<32xf32> to vector<32x1xf32>
    %cst_57 = arith.constant 3.200000e+01 : f32
    %195 = vector.broadcast %cst_57 : f32 to vector<32x1xf32>
    %196 = arith.divf %194, %195 : vector<32x1xf32>
    %197 = vector.broadcast %196 : vector<32x1xf32> to vector<32x32xf32>
    %198 = arith.subf %192, %197 : vector<32x32xf32>
    %199 = vector.broadcast %196 : vector<32x1xf32> to vector<32x32xf32>
    %200 = arith.subf %192, %199 : vector<32x32xf32>
    %201 = arith.mulf %198, %200 : vector<32x32xf32>
    %cst_58 = arith.constant dense<0.000000e+00> : vector<32xf32>
    %202 = vector.multi_reduction <add>, %201, %cst_58 [1] : vector<32x32xf32> to vector<32xf32>
    %203 = vector.shape_cast %202 : vector<32xf32> to vector<32x1xf32>
    %cst_59 = arith.constant 3.200000e+01 : f32
    %204 = vector.broadcast %cst_59 : f32 to vector<32x1xf32>
    %205 = arith.divf %203, %204 : vector<32x1xf32>
    %206 = vector.broadcast %196 : vector<32x1xf32> to vector<32x32xf32>
    %207 = arith.subf %192, %206 : vector<32x32xf32>
    %cst_60 = arith.constant 9.99999974E-6 : f32
    %208 = vector.broadcast %cst_60 : f32 to vector<32x1xf32>
    %209 = arith.addf %205, %208 : vector<32x1xf32>
    %210 = math.rsqrt %209 : vector<32x1xf32>
    %211 = vector.broadcast %210 : vector<32x1xf32> to vector<32x32xf32>
    %212 = arith.mulf %207, %211 : vector<32x32xf32>
    %213 = vector.broadcast %79 : vector<1x32xf32> to vector<32x32xf32>
    %214 = arith.mulf %212, %213 : vector<32x32xf32>
    %215 = vector.broadcast %80 : vector<1x32xf32> to vector<32x32xf32>
    %216 = arith.addf %214, %215 : vector<32x32xf32>
    %217 = arith.truncf %216 : vector<32x32xf32> to vector<32x32xbf16>
    %cst_61 = arith.constant dense<0.000000e+00> : vector<32x32xf32>
    %218 = tpu.matmul %217, %72, %cst_61 {dimension_numbers = #tpu.dot_dimension_numbers<[1], [0], [0], [1], [0, 0, 1, 1], [], []>} : vector<32x32xbf16>, vector<32x32xbf16>, vector<32x32xf32> -> vector<32x32xf32>
    %219 = vector.broadcast %81 : vector<1x32xf32> to vector<32x32xf32>
    %220 = arith.addf %218, %219 : vector<32x32xf32>
    %cst_62 = arith.constant 0.000000e+00 : f32
    %221 = vector.broadcast %cst_62 : f32 to vector<32x32xf32>
    %222 = arith.maximumf %220, %221 : vector<32x32xf32>
    %223 = arith.truncf %222 : vector<32x32xf32> to vector<32x32xbf16>
    %cst_63 = arith.constant dense<0.000000e+00> : vector<32x32xf32>
    %224 = tpu.matmul %223, %74, %cst_63 {dimension_numbers = #tpu.dot_dimension_numbers<[1], [0], [0], [1], [0, 0, 1, 1], [], []>} : vector<32x32xbf16>, vector<32x32xbf16>, vector<32x32xf32> -> vector<32x32xf32>
    %225 = arith.addf %216, %224 : vector<32x32xf32>
    %226 = vector.broadcast %82 : vector<1x32xf32> to vector<32x32xf32>
    %227 = arith.addf %225, %226 : vector<32x32xf32>
    %c1_64 = arith.constant 1 : index
    %c0_65 = arith.constant 0 : index
    %c0_66 = arith.constant 0 : index
    %228 = vector.load %arg7[%c1_64, %c0_65, %c0_66] : memref<2x32x96xbf16, #tpu.memory_space<vmem>>, vector<1x32x96xbf16>
    %229 = vector.shape_cast %228 : vector<1x32x96xbf16> to vector<32x96xbf16>
    %c2 = arith.constant 2 : index
    %c0_67 = arith.constant 0 : index
    %c0_68 = arith.constant 0 : index
    %230 = vector.load %arg8[%c2, %c0_67, %c0_68] : memref<5x32x32xbf16, #tpu.memory_space<vmem>>, vector<1x32x32xbf16>
    %231 = vector.shape_cast %230 : vector<1x32x32xbf16> to vector<32x32xbf16>
    %c3 = arith.constant 3 : index
    %c0_69 = arith.constant 0 : index
    %c0_70 = arith.constant 0 : index
    %232 = vector.load %arg8[%c3, %c0_69, %c0_70] : memref<5x32x32xbf16, #tpu.memory_space<vmem>>, vector<1x32x32xbf16>
    %233 = vector.shape_cast %232 : vector<1x32x32xbf16> to vector<32x32xbf16>
    %234 = vector.extract_strided_slice %2 {offsets = [1, 0, 0], sizes = [1, 32, 32], strides = [1, 1, 1]} : vector<2x32x32xf32> to vector<1x32x32xf32>
    %235 = vector.shape_cast %234 : vector<1x32x32xf32> to vector<32x32xf32>
    %236 = vector.extract_strided_slice %0 {offsets = [6, 0], sizes = [1, 32], strides = [1, 1]} : vector<27x32xf32> to vector<1x32xf32>
    %237 = vector.extract_strided_slice %0 {offsets = [7, 0], sizes = [1, 32], strides = [1, 1]} : vector<27x32xf32> to vector<1x32xf32>
    %238 = vector.extract_strided_slice %0 {offsets = [8, 0], sizes = [1, 32], strides = [1, 1]} : vector<27x32xf32> to vector<1x32xf32>
    %239 = vector.extract_strided_slice %0 {offsets = [9, 0], sizes = [1, 32], strides = [1, 1]} : vector<27x32xf32> to vector<1x32xf32>
    %240 = vector.extract_strided_slice %0 {offsets = [10, 0], sizes = [1, 32], strides = [1, 1]} : vector<27x32xf32> to vector<1x32xf32>
    %241 = vector.extract_strided_slice %0 {offsets = [11, 0], sizes = [1, 32], strides = [1, 1]} : vector<27x32xf32> to vector<1x32xf32>
    %cst_71 = arith.constant dense<0.000000e+00> : vector<32xf32>
    %242 = vector.multi_reduction <add>, %227, %cst_71 [1] : vector<32x32xf32> to vector<32xf32>
    %243 = vector.shape_cast %242 : vector<32xf32> to vector<32x1xf32>
    %cst_72 = arith.constant 3.200000e+01 : f32
    %244 = vector.broadcast %cst_72 : f32 to vector<32x1xf32>
    %245 = arith.divf %243, %244 : vector<32x1xf32>
    %246 = vector.broadcast %245 : vector<32x1xf32> to vector<32x32xf32>
    %247 = arith.subf %227, %246 : vector<32x32xf32>
    %248 = vector.broadcast %245 : vector<32x1xf32> to vector<32x32xf32>
    %249 = arith.subf %227, %248 : vector<32x32xf32>
    %250 = arith.mulf %247, %249 : vector<32x32xf32>
    %cst_73 = arith.constant dense<0.000000e+00> : vector<32xf32>
    %251 = vector.multi_reduction <add>, %250, %cst_73 [1] : vector<32x32xf32> to vector<32xf32>
    %252 = vector.shape_cast %251 : vector<32xf32> to vector<32x1xf32>
    %cst_74 = arith.constant 3.200000e+01 : f32
    %253 = vector.broadcast %cst_74 : f32 to vector<32x1xf32>
    %254 = arith.divf %252, %253 : vector<32x1xf32>
    %255 = vector.broadcast %245 : vector<32x1xf32> to vector<32x32xf32>
    %256 = arith.subf %227, %255 : vector<32x32xf32>
    %cst_75 = arith.constant 9.99999974E-6 : f32
    %257 = vector.broadcast %cst_75 : f32 to vector<32x1xf32>
    %258 = arith.addf %254, %257 : vector<32x1xf32>
    %259 = math.rsqrt %258 : vector<32x1xf32>
    %260 = vector.broadcast %259 : vector<32x1xf32> to vector<32x32xf32>
    %261 = arith.mulf %256, %260 : vector<32x32xf32>
    %262 = vector.broadcast %236 : vector<1x32xf32> to vector<32x32xf32>
    %263 = arith.mulf %261, %262 : vector<32x32xf32>
    %264 = vector.broadcast %237 : vector<1x32xf32> to vector<32x32xf32>
    %265 = arith.addf %263, %264 : vector<32x32xf32>
    %266 = arith.truncf %265 : vector<32x32xf32> to vector<32x32xbf16>
    %cst_76 = arith.constant dense<0.000000e+00> : vector<32x96xf32>
    %267 = tpu.matmul %266, %229, %cst_76 {dimension_numbers = #tpu.dot_dimension_numbers<[1], [0], [0], [1], [0, 0, 1, 1], [], []>} : vector<32x32xbf16>, vector<32x96xbf16>, vector<32x96xf32> -> vector<32x96xf32>
    %268 = arith.truncf %267 : vector<32x96xf32> to vector<32x96xbf16>
    %269 = vector.extract_strided_slice %268 {offsets = [0, 64], sizes = [32, 32], strides = [1, 1]} : vector<32x96xbf16> to vector<32x32xbf16>
    %cst_77 = arith.constant 0.000000e+00 : f32
    %270 = vector.broadcast %cst_77 : f32 to vector<32x32xf32>
    %271 = vector.extract_strided_slice %268 {offsets = [0, 0], sizes = [32, 16], strides = [1, 1]} : vector<32x96xbf16> to vector<32x16xbf16>
    %272 = vector.extract_strided_slice %268 {offsets = [0, 32], sizes = [32, 16], strides = [1, 1]} : vector<32x96xbf16> to vector<32x16xbf16>
    %cst_78 = arith.constant dense<0.000000e+00> : vector<32x32xf32>
    %273 = tpu.matmul %271, %272, %cst_78 {dimension_numbers = #tpu.dot_dimension_numbers<[1], [1], [0], [0], [0, 0, 1, 0], [], []>} : vector<32x16xbf16>, vector<32x16xbf16>, vector<32x32xf32> -> vector<32x32xf32>
    %cst_79 = arith.constant 2.500000e-01 : f32
    %274 = vector.broadcast %cst_79 : f32 to vector<32x32xf32>
    %275 = arith.mulf %273, %274 : vector<32x32xf32>
    %276 = arith.addf %275, %235 : vector<32x32xf32>
    %cst_80 = arith.constant dense<0xFF800000> : vector<32xf32>
    %277 = vector.multi_reduction <maximumf>, %276, %cst_80 [1] : vector<32x32xf32> to vector<32xf32>
    %278 = vector.shape_cast %277 : vector<32xf32> to vector<32x1xf32>
    %279 = vector.broadcast %278 : vector<32x1xf32> to vector<32x32xf32>
    %280 = arith.subf %276, %279 : vector<32x32xf32>
    %281 = math.exp %280 : vector<32x32xf32>
    %cst_81 = arith.constant dense<0.000000e+00> : vector<32xf32>
    %282 = vector.multi_reduction <add>, %281, %cst_81 [1] : vector<32x32xf32> to vector<32xf32>
    %283 = vector.shape_cast %282 : vector<32xf32> to vector<32x1xf32>
    %284 = tpu.reciprocal %283 {approx = true} : vector<32x1xf32> -> vector<32x1xf32>
    %285 = vector.broadcast %284 : vector<32x1xf32> to vector<32x32xf32>
    %286 = arith.mulf %281, %285 : vector<32x32xf32>
    %287 = arith.truncf %286 : vector<32x32xf32> to vector<32x32xbf16>
    %cst_82 = arith.constant dense<0.000000e+00> : vector<32x32xf32>
    %288 = tpu.matmul %287, %269, %cst_82 {dimension_numbers = #tpu.dot_dimension_numbers<[1], [0], [0], [1], [0, 0, 1, 1], [], []>} : vector<32x32xbf16>, vector<32x32xbf16>, vector<32x32xf32> -> vector<32x32xf32>
    %289 = vector.extract_strided_slice %0 {offsets = [25, 0], sizes = [1, 32], strides = [1, 1]} : vector<27x32xf32> to vector<1x32xf32>
    %290 = vector.broadcast %289 : vector<1x32xf32> to vector<32x32xf32>
    %291 = arith.mulf %288, %290 : vector<32x32xf32>
    %292 = arith.addf %270, %291 : vector<32x32xf32>
    %293 = vector.extract_strided_slice %268 {offsets = [0, 16], sizes = [32, 16], strides = [1, 1]} : vector<32x96xbf16> to vector<32x16xbf16>
    %294 = vector.extract_strided_slice %268 {offsets = [0, 48], sizes = [32, 16], strides = [1, 1]} : vector<32x96xbf16> to vector<32x16xbf16>
    %cst_83 = arith.constant dense<0.000000e+00> : vector<32x32xf32>
    %295 = tpu.matmul %293, %294, %cst_83 {dimension_numbers = #tpu.dot_dimension_numbers<[1], [1], [0], [0], [0, 0, 1, 0], [], []>} : vector<32x16xbf16>, vector<32x16xbf16>, vector<32x32xf32> -> vector<32x32xf32>
    %cst_84 = arith.constant 2.500000e-01 : f32
    %296 = vector.broadcast %cst_84 : f32 to vector<32x32xf32>
    %297 = arith.mulf %295, %296 : vector<32x32xf32>
    %298 = arith.addf %297, %235 : vector<32x32xf32>
    %cst_85 = arith.constant dense<0xFF800000> : vector<32xf32>
    %299 = vector.multi_reduction <maximumf>, %298, %cst_85 [1] : vector<32x32xf32> to vector<32xf32>
    %300 = vector.shape_cast %299 : vector<32xf32> to vector<32x1xf32>
    %301 = vector.broadcast %300 : vector<32x1xf32> to vector<32x32xf32>
    %302 = arith.subf %298, %301 : vector<32x32xf32>
    %303 = math.exp %302 : vector<32x32xf32>
    %cst_86 = arith.constant dense<0.000000e+00> : vector<32xf32>
    %304 = vector.multi_reduction <add>, %303, %cst_86 [1] : vector<32x32xf32> to vector<32xf32>
    %305 = vector.shape_cast %304 : vector<32xf32> to vector<32x1xf32>
    %306 = tpu.reciprocal %305 {approx = true} : vector<32x1xf32> -> vector<32x1xf32>
    %307 = vector.broadcast %306 : vector<32x1xf32> to vector<32x32xf32>
    %308 = arith.mulf %303, %307 : vector<32x32xf32>
    %309 = arith.truncf %308 : vector<32x32xf32> to vector<32x32xbf16>
    %cst_87 = arith.constant dense<0.000000e+00> : vector<32x32xf32>
    %310 = tpu.matmul %309, %269, %cst_87 {dimension_numbers = #tpu.dot_dimension_numbers<[1], [0], [0], [1], [0, 0, 1, 1], [], []>} : vector<32x32xbf16>, vector<32x32xbf16>, vector<32x32xf32> -> vector<32x32xf32>
    %311 = vector.extract_strided_slice %0 {offsets = [26, 0], sizes = [1, 32], strides = [1, 1]} : vector<27x32xf32> to vector<1x32xf32>
    %312 = vector.broadcast %311 : vector<1x32xf32> to vector<32x32xf32>
    %313 = arith.mulf %310, %312 : vector<32x32xf32>
    %314 = arith.addf %292, %313 : vector<32x32xf32>
    %315 = arith.addf %265, %314 : vector<32x32xf32>
    %cst_88 = arith.constant dense<0.000000e+00> : vector<32xf32>
    %316 = vector.multi_reduction <add>, %315, %cst_88 [1] : vector<32x32xf32> to vector<32xf32>
    %317 = vector.shape_cast %316 : vector<32xf32> to vector<32x1xf32>
    %cst_89 = arith.constant 3.200000e+01 : f32
    %318 = vector.broadcast %cst_89 : f32 to vector<32x1xf32>
    %319 = arith.divf %317, %318 : vector<32x1xf32>
    %320 = vector.broadcast %319 : vector<32x1xf32> to vector<32x32xf32>
    %321 = arith.subf %315, %320 : vector<32x32xf32>
    %322 = vector.broadcast %319 : vector<32x1xf32> to vector<32x32xf32>
    %323 = arith.subf %315, %322 : vector<32x32xf32>
    %324 = arith.mulf %321, %323 : vector<32x32xf32>
    %cst_90 = arith.constant dense<0.000000e+00> : vector<32xf32>
    %325 = vector.multi_reduction <add>, %324, %cst_90 [1] : vector<32x32xf32> to vector<32xf32>
    %326 = vector.shape_cast %325 : vector<32xf32> to vector<32x1xf32>
    %cst_91 = arith.constant 3.200000e+01 : f32
    %327 = vector.broadcast %cst_91 : f32 to vector<32x1xf32>
    %328 = arith.divf %326, %327 : vector<32x1xf32>
    %329 = vector.broadcast %319 : vector<32x1xf32> to vector<32x32xf32>
    %330 = arith.subf %315, %329 : vector<32x32xf32>
    %cst_92 = arith.constant 9.99999974E-6 : f32
    %331 = vector.broadcast %cst_92 : f32 to vector<32x1xf32>
    %332 = arith.addf %328, %331 : vector<32x1xf32>
    %333 = math.rsqrt %332 : vector<32x1xf32>
    %334 = vector.broadcast %333 : vector<32x1xf32> to vector<32x32xf32>
    %335 = arith.mulf %330, %334 : vector<32x32xf32>
    %336 = vector.broadcast %238 : vector<1x32xf32> to vector<32x32xf32>
    %337 = arith.mulf %335, %336 : vector<32x32xf32>
    %338 = vector.broadcast %239 : vector<1x32xf32> to vector<32x32xf32>
    %339 = arith.addf %337, %338 : vector<32x32xf32>
    %340 = arith.truncf %339 : vector<32x32xf32> to vector<32x32xbf16>
    %cst_93 = arith.constant dense<0.000000e+00> : vector<32x32xf32>
    %341 = tpu.matmul %340, %231, %cst_93 {dimension_numbers = #tpu.dot_dimension_numbers<[1], [0], [0], [1], [0, 0, 1, 1], [], []>} : vector<32x32xbf16>, vector<32x32xbf16>, vector<32x32xf32> -> vector<32x32xf32>
    %342 = vector.broadcast %240 : vector<1x32xf32> to vector<32x32xf32>
    %343 = arith.addf %341, %342 : vector<32x32xf32>
    %cst_94 = arith.constant 0.000000e+00 : f32
    %344 = vector.broadcast %cst_94 : f32 to vector<32x32xf32>
    %345 = arith.maximumf %343, %344 : vector<32x32xf32>
    %346 = arith.truncf %345 : vector<32x32xf32> to vector<32x32xbf16>
    %cst_95 = arith.constant dense<0.000000e+00> : vector<32x32xf32>
    %347 = tpu.matmul %346, %233, %cst_95 {dimension_numbers = #tpu.dot_dimension_numbers<[1], [0], [0], [1], [0, 0, 1, 1], [], []>} : vector<32x32xbf16>, vector<32x32xbf16>, vector<32x32xf32> -> vector<32x32xf32>
    %348 = arith.addf %339, %347 : vector<32x32xf32>
    %349 = vector.broadcast %241 : vector<1x32xf32> to vector<32x32xf32>
    %350 = arith.addf %348, %349 : vector<32x32xf32>
    %351 = arith.truncf %350 : vector<32x32xf32> to vector<32x32xbf16>
    %c4 = arith.constant 4 : index
    %c0_96 = arith.constant 0 : index
    %c0_97 = arith.constant 0 : index
    %352 = vector.load %arg8[%c4, %c0_96, %c0_97] : memref<5x32x32xbf16, #tpu.memory_space<vmem>>, vector<1x32x32xbf16>
    %353 = vector.shape_cast %352 : vector<1x32x32xbf16> to vector<32x32xbf16>
    %cst_98 = arith.constant dense<0.000000e+00> : vector<32x32xf32>
    %354 = tpu.matmul %351, %353, %cst_98 {dimension_numbers = #tpu.dot_dimension_numbers<[1], [0], [0], [1], [0, 0, 1, 1], [], []>} : vector<32x32xbf16>, vector<32x32xbf16>, vector<32x32xf32> -> vector<32x32xf32>
    %355 = vector.shape_cast %354 : vector<32x32xf32> to vector<4x8x32xf32>
    %356 = vector.shape_cast %350 : vector<32x32xf32> to vector<4x8x32xf32>
    %357 = vector.extract_strided_slice %355 {offsets = [0, 7, 0], sizes = [4, 1, 32], strides = [1, 1, 1]} : vector<4x8x32xf32> to vector<4x1x32xf32>
    %358 = vector.broadcast %357 : vector<4x1x32xf32> to vector<4x8x32xf32>
    %359 = arith.mulf %355, %358 : vector<4x8x32xf32>
    %cst_99 = arith.constant dense<0.000000e+00> : vector<4x8xf32>
    %360 = vector.multi_reduction <add>, %359, %cst_99 [2] : vector<4x8x32xf32> to vector<4x8xf32>
    %cst_100 = arith.constant dense<0xFF800000> : vector<4xf32>
    %361 = vector.multi_reduction <maximumf>, %360, %cst_100 [1] : vector<4x8xf32> to vector<4xf32>
    %362 = vector.shape_cast %361 : vector<4xf32> to vector<4x1xf32>
    %363 = vector.broadcast %362 : vector<4x1xf32> to vector<4x8xf32>
    %364 = arith.subf %360, %363 : vector<4x8xf32>
    %365 = math.exp %364 : vector<4x8xf32>
    %cst_101 = arith.constant dense<0.000000e+00> : vector<4xf32>
    %366 = vector.multi_reduction <add>, %365, %cst_101 [1] : vector<4x8xf32> to vector<4xf32>
    %367 = vector.shape_cast %366 : vector<4xf32> to vector<4x1xf32>
    %368 = tpu.reciprocal %367 {approx = true} : vector<4x1xf32> -> vector<4x1xf32>
    %369 = vector.broadcast %368 : vector<4x1xf32> to vector<4x8xf32>
    %370 = arith.mulf %365, %369 : vector<4x8xf32>
    %371 = vector.shape_cast %370 : vector<4x8xf32> to vector<4x8x1xf32>
    %372 = vector.broadcast %371 : vector<4x8x1xf32> to vector<4x8x32xf32>
    %373 = arith.mulf %372, %356 : vector<4x8x32xf32>
    %cst_102 = arith.constant dense<0.000000e+00> : vector<4x32xf32>
    %374 = vector.multi_reduction <add>, %373, %cst_102 [1] : vector<4x8x32xf32> to vector<4x32xf32>
    %375 = arith.truncf %374 : vector<4x32xf32> to vector<4x32xbf16>
    %c0_103 = arith.constant 0 : index
    %c0_104 = arith.constant 0 : index
    %376 = vector.load %arg9[%c0_103, %c0_104] : memref<32x4xbf16, #tpu.memory_space<vmem>>, vector<32x4xbf16>
    %cst_105 = arith.constant dense<0.000000e+00> : vector<4x4xf32>
    %377 = tpu.matmul %375, %376, %cst_105 {dimension_numbers = #tpu.dot_dimension_numbers<[1], [0], [0], [1], [0, 0, 1, 1], [], []>} : vector<4x32xbf16>, vector<32x4xbf16>, vector<4x4xf32> -> vector<4x4xf32>
    %c0_106 = arith.constant 0 : index
    %c0_107 = arith.constant 0 : index
    %378 = vector.load %arg10[%c0_106, %c0_107] : memref<1x4xf32, #tpu.memory_space<vmem>>, vector<1x4xf32>
    %379 = vector.broadcast %378 : vector<1x4xf32> to vector<4x4xf32>
    %380 = arith.addf %377, %379 : vector<4x4xf32>
    %c0_108 = arith.constant 0 : index
    %c0_109 = arith.constant 0 : index
    %381 = vector.load %arg11[%c0_108, %c0_109] : memref<4x4xf32, #tpu.memory_space<vmem>>, vector<4x4xf32>
    tpu.vector_store %arg11[%c0_108, %c0_109], %380 {strides = array<i32>} : memref<4x4xf32, #tpu.memory_space<vmem>>, vector<4x4xf32>,
    return
  }
}

</mosaic_0001>

<bundles_post_ra>
// kernel: tpu_custom_call.1
= control target key start
LH: loop header
LB: loop body
LE: loop exit
PB: predicated region body
PF: predicated region fallthrough
CT: control target
= control target key end

     0   :  { %16 = vsyncpa [#allocation3], 0  ;;  %s3980_s0 = inlined_call_operand.hbm [shape: f32[4,8,16], index: 0, kind: input, shape index: {}]   ;;  %s3981_s1 = inlined_call_operand.vmem [shape: f32[4,8], index: 1, kind: input, shape index: {}]   ;;  %s3982_s2 = inlined_call_operand.vmem [shape: f32[3,16], index: 2, kind: input, shape index: {}]   ;;  %s3983_s3 = inlined_call_operand.vmem [shape: bf16[8,16], index: 3, kind: input, shape index: {}]   ;;  %s3984_s4 = inlined_call_operand.vmem [shape: bf16[16,32], index: 4, kind: input, shape index: {}]   ;;  %s3985_s5 = inlined_call_operand.hbm [shape: f32[27,32], index: 5, kind: input, shape index: {}]   ;;  %s3986_s6 = inlined_call_operand.hbm [shape: f32[2,32,32], index: 6, kind: input, shape index: {}]   ;;  %s3987_s7 = inlined_call_operand.hbm [shape: bf16[2,32,96], index: 7, kind: input, shape index: {}]   ;;  %s3988_s8 = inlined_call_operand.hbm [shape: bf16[5,32,32], index: 8, kind: input, shape index: {}]   ;;  %s3989_s9 = inlined_call_operand.vmem [shape: bf16[32,4], index: 9, kind: input, shape index: {}]   ;;  %s3990_s10 = inlined_call_operand.vmem [shape: f32[1,4], index: 10, kind: input, shape index: {}]   ;;  %s3991_s11 = inlined_call_operand.hbm [shape: f32[4,4], index: 11, kind: output, shape index: {}]  }
   0x1   :  { %17 = vsyncpa [#allocation6], 0 }
   0x2   :  { %18 = vsyncpa [#allocation9], 0 }
   0x3   :  { %19 = vsyncpa [#allocation4], 0  ;;  %s3347_s17 = smov [#allocation5]   ;;  %s3348_s19 = smov [#allocation8]  }
   0x4   :  { %s45_s18 = sshll.u32 %s3347_s17, 4  ;;  %s69_s20 = sshll.u32 %s3348_s19, 4  ;;  %s46_s18 = int_to_ptr.vmem [resolvable:$true] %s45_s18  ;;  %s70_s20 = int_to_ptr.vmem [resolvable:$true] %s69_s20 }
   0x5   :  { %s3227_s21 = scalar_lea.vmem %s46_s18, 512  ;;  %p3232_p1 = scmp.lt.s32.totalorder %s46_s18, %s46_s18 }
   0x6   :  { %p3228_p0 = scmp.ne.s32.totalorder %s46_s18, %s3227_s21  ;;  %p3233_p2 = scmp.lt.s32.totalorder %s3227_s21, %s3227_s21 }
   0x8   :  { %p3234_p3 = por %p3233_p2, %p3232_p1 }
   0xa   :  { %p3235_p4 = pnand %p3234_p3, %p3228_p0 }
   0xc   :  { %3238 = shalt.err (!%p3235_p4)
}
   0xd   :  { %s3349_s22 = smov 128   ;;  %s3350_s23 = smov 8  }
   0xe   :  { %51 = dma.hbm_to_vmem [thread:$0]  %s3985_s5, 512, %s46_s18, [#allocation6], %s3349_s22, %s3349_s22, %s3350_s23  }
   0xf   :  { %s3247_s26 = scalar_lea.vmem %s70_s20, 512  ;;  %p3252_p6 = scmp.lt.s32.totalorder %s70_s20, %s70_s20 }
  0x10   :  { %p3248_p5 = scmp.ne.s32.totalorder %s70_s20, %s3247_s26  ;;  %p3253_p7 = scmp.lt.s32.totalorder %s3247_s26, %s3247_s26 }
  0x12   :  { %p3254_p8 = por %p3253_p7, %p3252_p6 }
  0x14   :  { %p3255_p9 = pnand %p3254_p8, %p3248_p5 }
  0x16   :  { %3258 = shalt.err (!%p3255_p9)
}
  0x17   :  { %s3351_s27 = smov 64   ;;  %s3352_s28 = smov 4  }
  0x18   :  { %75 = dma.hbm_to_vmem [thread:$0]  %s3987_s7, 512, %s70_s20, [#allocation9], %s3351_s27, %s3351_s27, %s3352_s28  }
  0x19   :  { %s3353_s12 = smov [#allocation2]   ;;  %s3354_s14 = smov [#allocation7]  }
  0x1a   :  { %s25_s13 = sshll.u32 %s3353_s12, 4  ;;  %s57_s5 = sshll.u32 %s3354_s14, 4  ;;  %s26_s13 = int_to_ptr.vmem [resolvable:$true] %s25_s13  ;;  %s58_s5 = int_to_ptr.vmem [resolvable:$true] %s57_s5 }
  0x1b   :  { %s3267_s15 = scalar_lea.vmem %s26_s13, 512  ;;  %p3272_p11 = scmp.lt.s32.totalorder %s26_s13, %s26_s13 }
  0x1c   :  { %p3268_p10 = scmp.ne.s32.totalorder %s26_s13, %s3267_s15  ;;  %p3273_p12 = scmp.lt.s32.totalorder %s3267_s15, %s3267_s15 }
  0x1e   :  { %p3274_p13 = por %p3273_p12, %p3272_p11 }
  0x20   :  { %p3275_p0 = pnand %p3274_p13, %p3268_p10 }
  0x22   :  { %3278 = shalt.err (!%p3275_p0)
}
  0x23   :  { %31 = dma.hbm_to_vmem [thread:$0]  %s3980_s0, 512, %s26_s13, [#allocation3], %s3349_s22, %s3349_s22, %s3350_s23  }
  0x24   :  { %s3287_s7 = scalar_lea.vmem %s58_s5, 1024  ;;  %p3292_p2 = scmp.lt.s32.totalorder %s58_s5, %s58_s5 }
  0x25   :  { %p3288_p1 = scmp.ne.s32.totalorder %s58_s5, %s3287_s7  ;;  %p3293_p3 = scmp.lt.s32.totalorder %s3287_s7, %s3287_s7 }
  0x27   :  { %p3294_p4 = por %p3293_p3, %p3292_p2 }
  0x29   :  { %p3295_p5 = pnand %p3294_p4, %p3288_p1 }
  0x2b   :  { %3298 = shalt.err (!%p3295_p5)
}
  0x2c   :  { %63 = dma.hbm_to_vmem [thread:$0]  %s3986_s6, 1024, %s58_s5, [#allocation6], %s3349_s22, %s3349_s22, %s3350_s23  }
  0x2d   :  { %s3355_s20 = smov [#allocation10]  }
  0x2e   :  { %s81_s21 = sshll.u32 %s3355_s20, 4  ;;  %s82_s21 = int_to_ptr.vmem [resolvable:$true] %s81_s21 }
  0x2f   :  { %s3307_s24 = scalar_lea.vmem %s82_s21, 1280  ;;  %p3312_p7 = scmp.lt.s32.totalorder %s82_s21, %s82_s21 }
  0x30   :  { %p3308_p6 = scmp.ne.s32.totalorder %s82_s21, %s3307_s24  ;;  %p3313_p8 = scmp.lt.s32.totalorder %s3307_s24, %s3307_s24 }
  0x32   :  { %p3314_p9 = por %p3313_p8, %p3312_p7 }
  0x34   :  { %p3315_p10 = pnand %p3314_p9, %p3308_p6 }
  0x36   :  { %3318 = shalt.err (!%p3315_p10)
}
  0x37   :  { %87 = dma.hbm_to_vmem [thread:$0]  %s3988_s8, 1280, %s82_s21, [#allocation9], %s3351_s27, %s3351_s27, %s3352_s28  }
  0x38   :  { %3339 = dma.done.wait [#allocation3], 512  }
  0x39   :  { %3340 = vsyncadd [#allocation3], 4294966784 }
  0x3a   :  { %3341 = dma.done.wait [#allocation6], 1536  }
  0x3b   :  { %3342 = vsyncadd [#allocation6], 4294965760 }
  0x3c   :  { %3343 = dma.done.wait [#allocation9], 1792  }
  0x3d   :  { %3344 = vsyncadd [#allocation9], 4294965504  ;;  %v3356_v0 = vmov 0.0   ;;  %vm3357_vm0 = vmmov 0   ;;  %vm238_vm1 = vcmask 1043456   ;;  %vm234_vm2 = vcmask 64512  }
  0x3e   :  { %2843 = vmatprep.subr.bf16.mxu0 %v3356_v0  ;;  %2845 = vmatprep.mubr.msk.bf16.mxu0 %vm3357_vm0, %v3356_v0  ;;  %v229_v1 = vld [vmem:[%s3983_s3] sm:$0xf]  ;;  %v211_v5 = vlaneseq  ;;  %vm283_vm3 = vcmask 125952   ;;  %vm125_vm4 = vcmask 130048   ;;  %v122_v24 = vld [vmem:[#allocation2 + $0x8] sm:$0xff]  ;;  %v123_v25 = vld [vmem:[#allocation2 + $0x10] sm:$0xff] }
  0x3f   :  { %v227_v2 = vld [vmem:[%s3981_s1] sm:$0xf]  ;;  %v240_v3 = vsel %vm238_vm1, %v229_v1, 0  ;;  %v124_v27 = vld [vmem:[#allocation2 + $0x18] sm:$0xff]  ;;  %v133_v28 = vsel %vm125_vm4, %v122_v24, 0.0  ;;  %v140_v29 = vsel %vm125_vm4, %v123_v25, 0.0 }
  0x40   :  { %v228_v4 = vpack.c.bf16 %v227_v2, %v227_v2  ;;  %2844 = vmatpush3.bf16.msra.mxu0 %v240_v3  ;;  %v3469_v6 = vshrl.u32 %v211_v5, 7  ;;  %v3477_v8 = vld [vmem:[%s3982_s2] sm:$0x7]  ;;  %v147_v31 = vsel %vm125_vm4, %v124_v27, 0.0  ;;  %v134_v32 = vrot.slane %v133_v28, 4  ;;  %s3359_s3 = smov 96  }
  0x41   :  { %v3050_v22 = vld [vmem:[%s3984_s4] sm:$0xff]   ;;  %v141_v33 = vrot.slane %v140_v29, 4  ;;  %v148_v34 = vrot.slane %v147_v31, 4  ;;  %vm416_vm5 = vcmask 1042432   ;;  %vm438_vm6 = vcmask 261120   ;;  %s3360_s4 = smov 88  }
  0x42   :  { %v3472_v7 = vsub.s32 2, %v3469_v6  ;;  %2849 = vmatprep.subr.bf16.mxu1 %v3050_v22  ;;  %v121_v23 = vld [vmem:[#allocation2] sm:$0xff]  ;;  %v135_v36 = vadd.f32 %v134_v32, %v133_v28  ;;  %s3361_s29 = smov 120   ;;  %s3362_s30 = smov 80   ;;  %vm2437_vm7 = vcmask 1041409   ;;  %vm2439_vm8 = vcmask 1042434  }
  0x43   :  { %2846 = vmatmul.mubr.msk.bf16.vlgmr.msra.gmra.mxu0 %vm234_vm2, %v228_v4  ;;  %2850 = vmatpush3.bf16.msra.mxu1 %v3050_v22  ;;  %v126_v26 = vsel %vm125_vm4, %v121_v23, 0.0  ;;  %v142_v37 = vadd.f32 %v141_v33, %v140_v29  ;;  %v149_v38 = vadd.f32 %v148_v34, %v147_v31  ;;  %s3363_s12 = smov 112   ;;  %s3364_s13 = smov 72   ;;  %vm2441_vm9 = vcmask 1043459  }
  0x44   :  { %v233_v9 = vrot.slane %v3477_v8, %v3472_v7  ;;  %v127_v30 = vrot.slane %v126_v26, 4  ;;  %v136_v40 = vrot.slane %v135_v36, 2  ;;  %s3365_s14 = smov 104   ;;  %vm2444_vm10 = vcmask 60416   ;;  %s3367_s7 = smov [#allocation11]  }
  0x45   :  { %v143_v41 = vrot.slane %v142_v37, 2  ;;  %v150_v42 = vrot.slane %v149_v38, 2  ;;  %s2688_s18 = sshll.u32 %s3367_s7, 4  ;;  %vm2680_vm11 = vcmask 27648   ;;  %s2689_s18 = int_to_ptr.vmem [resolvable:$true] %s2688_s18 }
  0x46   :  { %v128_v35 = vadd.f32 %v127_v30, %v126_v26  ;;  %v137_v44 = vadd.f32 %v136_v40, %v135_v36  ;;  %s3319_s19 = scalar_lea.vmem %s2689_s18, 64  ;;  %p3324_p12 = scmp.lt.s32.totalorder %s2689_s18, %s2689_s18 }
  0x47   :  { %v144_v45 = vadd.f32 %v143_v41, %v142_v37  ;;  %v151_v46 = vadd.f32 %v150_v42, %v149_v38  ;;  %p3320_p11 = scmp.ne.s32.totalorder %s2689_s18, %s3319_s19  ;;  %p3325_p13 = scmp.lt.s32.totalorder %s3319_s19, %s3319_s19 }
  0x48   :  { %v129_v39 = vrot.slane %v128_v35, 2  ;;  %v138_v48 = vrot.slane %v137_v44, 1 }
  0x49   :  { %v145_v49 = vrot.slane %v144_v45, 1  ;;  %v152_v50 = vrot.slane %v151_v46, 1  ;;  %p3326_p0 = por %p3325_p13, %p3324_p12 }
  0x4a   :  { %v130_v43 = vadd.f32 %v129_v39, %v128_v35  ;;  %v139_v52 = vadd.f32 %v138_v48, %v137_v44 }
  0x4b   :  { %v146_v53 = vadd.f32 %v145_v49, %v144_v45  ;;  %v153_v54 = vadd.f32 %v152_v50, %v151_v46  ;;  %v3358_v46 = vmov 1966171168   ;;  %v3504_v49 = vsub.s32 0, %v3469_v6  ;;  %p3327_p1 = pnand %p3326_p0, %p3320_p11 }
  0x4c   :  { %v131_v47 = vrot.slane %v130_v43, 1  ;;  %v156_v56 = vmul.f32 0.125, %v139_v52 }
  0x4d   :  { %v157_v57 = vmul.f32 0.125, %v146_v53  ;;  %v158_v58 = vmul.f32 0.125, %v153_v54 }
  0x4e   :  { %v132_v51 = vadd.f32 %v131_v47, %v130_v43  ;;  %v160_v60 = vsub.f32 %v122_v24, %v156_v56  ;;  %v298_v47 = vunpack.c.l.s4 %v3358_v46  ;;  %v3509_v56 = vsub.s32 1, %v3469_v6 }
  0x4f   :  { %v3491_v61 = vsub.f32 %v123_v25, %v157_v57  ;;  %v3493_v62 = vsub.f32 %v124_v27, %v158_v58 }
  0x50   :  { %v155_v55 = vmul.f32 0.125, %v132_v51  ;;  %v164_v1 = vmul.f32 %v160_v60, %v160_v60  ;;  %v299_v51 = vunpack.c.0.s8 %v298_v47 }
  0x51   :  { %v165_v2 = vmul.f32 %v3491_v61, %v3491_v61  ;;  %v166_v3 = vmul.f32 %v3493_v62, %v3493_v62 }
  0x52   :  { %v159_v59 = vsub.f32 %v121_v23, %v155_v55  ;;  %v214_v55 = vrot.slane %v3477_v8, %v3504_v49 }
  0x54   :  { %v163_v63 = vmul.f32 %v159_v59, %v159_v59 }
  0x56   :  { %v167_v4 = vsel %vm125_vm4, %v163_v63, 0.0 }
 0x103   :  { %v276_v10 = vpop.f32.mrf.mxu0 }
 0x104   :  { %v277_v11 = vadd.f32 %v276_v10, %v233_v9  ;;  %v174_v9 = vsel %vm125_vm4, %v164_v1, 0.0  ;;  %v181_v10 = vsel %vm125_vm4, %v165_v2, 0.0  ;;  %v302_v1 = vsub.s32 %v299_v51, %v3469_v6 }
 0x105   :  { %v2847_v12 = vpop.f32.mrf.mxu0 }
 0x106   :  { %v282_v13 = vmul.f32 0.5, %v277_v11  ;;  %v168_v11 = vrot.slane %v167_v4, 4  ;;  %v188_v12 = vsel %vm125_vm4, %v166_v3, 0.0 }
 0x107   :  { %v279_v14 = vpop.f32.mrf.mxu0 }
 0x108   :  { %v284_v15 = vsel %vm283_vm3, %v282_v13, -inf  ;;  %v182_v14 = vrot.slane %v181_v10, 4 }
 0x109   :  { %v2848_v16 = vpop.f32.mrf.mxu0  ;;  %285 = vmax.xlane.f32.xlu0 %v284_v15  ;;  %v189_v15 = vrot.slane %v188_v12, 4 }
 0x10a   :  { %v169_v16 = vadd.f32 %v168_v11, %v167_v4 }
 0x192   :  { %v286_v17 = vpop.xlane.xlu0 %285 }
 0x193   :  { %v287_v18 = vsub.f32 %v282_v13, %v286_v17  ;;  %v175_v13 = vrot.slane %v174_v9, 4 }
 0x195   :  { %v288_v19 = vmul.f32 1.442695, %v287_v18  ;;  %v176_v17 = vadd.f32 %v175_v13, %v174_v9  ;;  %v183_v18 = vadd.f32 %v182_v14, %v181_v10  ;;  %v222_v9 = vrot.slane %v3477_v8, %v3509_v56 }
 0x197   :  { %3067 = vpow2.f32 %v288_v19  ;;  %v190_v19 = vadd.f32 %v189_v15, %v188_v12  ;;  %v177_v22 = vrot.slane %v176_v17, 2  ;;  %v184_v23 = vrot.slane %v183_v18, 2 }
 0x199   :  { %v191_v24 = vrot.slane %v190_v19, 2  ;;  %v178_v26 = vadd.f32 %v177_v22, %v176_v17  ;;  %v185_v27 = vadd.f32 %v184_v23, %v183_v18 }
 0x19b   :  { %v192_v28 = vadd.f32 %v191_v24, %v190_v19  ;;  %v179_v30 = vrot.slane %v178_v26, 1  ;;  %v186_v31 = vrot.slane %v185_v27, 1 }
 0x19d   :  { %v193_v32 = vrot.slane %v192_v28, 1  ;;  %v180_v34 = vadd.f32 %v179_v30, %v178_v26  ;;  %v187_v35 = vadd.f32 %v186_v31, %v185_v27  ;;  %v351_v30 = vsub.s32 4, %v3469_v6  ;;  %v3524_v31 = vld [vmem:[#allocation5 + $0x10] sm:$0xff] }
 0x19f   :  { %v194_v36 = vadd.f32 %v193_v32, %v192_v28  ;;  %v196_v38 = vmul.f32 0.125, %v180_v34  ;;  %v197_v39 = vmul.f32 0.125, %v187_v35 }
 0x1a1   :  { %v198_v40 = vmul.f32 0.125, %v194_v36  ;;  %v200_v42 = vadd.f32 1e-05, %v196_v38  ;;  %v201_v43 = vadd.f32 1e-05, %v197_v39 }
 0x1a3   :  { %v202_v44 = vadd.f32 1e-05, %v198_v40 }
 0x1a4   :  { %v3481_v20 = vpop.eup %3067 }
 0x1a5   :  { %v290_v21 = vsel %vm283_vm3, %v3481_v20, 0.0 }
 0x1a6   :  { %291 = vadd.xlane.f32.xlu0 %v290_v21  ;;  %v170_v21 = vrot.slane %v169_v16, 2 }
 0x1a8   :  { %v171_v25 = vadd.f32 %v170_v21, %v169_v16 }
 0x1aa   :  { %v172_v29 = vrot.slane %v171_v25, 1 }
 0x1ac   :  { %v173_v33 = vadd.f32 %v172_v29, %v171_v25  ;;  %v109_v29 = vld [vmem:[#allocation5 + $0x8] sm:$0xff] }
 0x1ad   :  { %v417_v32 = vrot.slane %v109_v29, 5  ;;  %v352_v34 = vrot.slane %v109_v29, %v351_v30 }
 0x1ae   :  { %v195_v37 = vmul.f32 0.125, %v173_v33  ;;  %v418_v33 = vrot.slane %v3524_v31, 5 }
 0x1b0   :  { %v199_v41 = vadd.f32 1e-05, %v195_v37  ;;  %v419_v36 = vsel %vm416_vm5, %v417_v32, %v418_v33 }
 0x1b2   :  { %3069 = vrsqrt.f32 %v199_v41 }
 0x1b3   :  { %3071 = vrsqrt.f32 %v200_v42 }
 0x1b4   :  { %3073 = vrsqrt.f32 %v201_v43 }
 0x1b5   :  { %3075 = vrsqrt.f32 %v202_v44 }
 0x1bf   :  { %v3070_v48 = vpop.eup %3069 }
 0x1c0   :  { %v3072_v50 = vpop.eup %3071  ;;  %v207_v57 = vmul.f32 %v3070_v48, %v159_v59 }
 0x1c1   :  { %v3074_v52 = vpop.eup %3073  ;;  %v208_v58 = vmul.f32 %v3072_v50, %v160_v60 }
 0x1c2   :  { %v3076_v53 = vpop.eup %3075  ;;  %v209_v2 = vmul.f32 %v3074_v52, %v3491_v61  ;;  %v215_v10 = vmul.f32 %v214_v55, %v207_v57 }
 0x1c3   :  { %v210_v4 = vmul.f32 %v3076_v53, %v3493_v62  ;;  %v216_v11 = vmul.f32 %v214_v55, %v208_v58 }
 0x1c4   :  { %v217_v13 = vmul.f32 %v214_v55, %v209_v2  ;;  %v223_v60 = vadd.f32 %v222_v9, %v215_v10 }
 0x1c5   :  { %v218_v59 = vmul.f32 %v214_v55, %v210_v4  ;;  %v224_v16 = vadd.f32 %v222_v9, %v216_v11 }
 0x1c6   :  { %v225_v61 = vadd.f32 %v222_v9, %v217_v13 }
 0x1c7   :  { %v226_v21 = vadd.f32 %v222_v9, %v218_v59 }
 0x22f   :  { %v292_v45 = vpop.xlane.xlu0 %291 }
 0x230   :  { %3077 = vrcp.f32 %v292_v45 }
 0x23d   :  { %v3078_v54 = vpop.eup %3077 }
 0x23e   :  { %v294_v63 = vmul.f32 %v3078_v54, %v3481_v20 }
 0x240   :  { %v295_v3 = vmul.f32 16.0, %v294_v63 }
 0x242   :  { %v303_v12 = vrot.slane %v295_v3, %v302_v1 }
 0x244   :  { %v304_v14 = vcombine.high %v303_v12, %v303_v12  ;;  %v311_v15 = vrot.slane %v303_v12, %v302_v1 }
 0x246   :  { %v318_v20 = vrot.slane %v304_v14, %v302_v1  ;;  %v319_v17 = vcombine.high %v311_v15, %v311_v15  ;;  %v324_v18 = vrot.slane %v311_v15, %v3504_v49 }
 0x248   :  { %v320_v19 = vcombine.high %v318_v20, %v318_v20  ;;  %v328_v62 = vrot.slane %v318_v20, %v3504_v49  ;;  %v332_v8 = vrot.slane %v319_v17, %v3504_v49  ;;  %v341_v22 = vmul.f32 %v324_v18, %v223_v60  ;;  %v3051_v20 = vld [vmem:[#allocation8 + $0x8] sm:$0xff]   ;;  %v3052_v17 = vld [vmem:[#allocation8] sm:$0xff]  }
 0x249   :  { %2855 = vmatprep.subr.bf16.mxu0 %v3051_v20 }
 0x24a   :  { %v342_v23 = vmul.f32 %v328_v62, %v224_v16  ;;  %v336_v24 = vrot.slane %v320_v19, %v3504_v49  ;;  %v343_v26 = vmul.f32 %v332_v8, %v225_v61  ;;  %2856 = vmatpush3.bf16.msra.mxu0 %v3051_v20 }
 0x24b   :  { %2857 = vmatprep.subr.bf16.mxu0 %v3052_v17 }
 0x24c   :  { %v345_v25 = vpack.c.bf16 %v342_v23, %v341_v22  ;;  %v344_v27 = vmul.f32 %v336_v24, %v226_v21 }
 0x24e   :  { %2851 = vmatprep.mubr.msk.bf16.mxu1 %vm125_vm4, %v345_v25  ;;  %v346_v28 = vpack.c.bf16 %v344_v27, %v343_v26  ;;  %2858 = vmatpush3.bf16.msra.mxu0 %v3052_v17 }
 0x250   :  { %2852 = vmatmul.mubr.msk.bf16.vlgmr.msra.gmra.mxu1 %vm125_vm4, %v346_v28  ;;  %v3537_v28 = vld [vmem:[#allocation5] sm:$0xff] }
 0x251   :  { %v495_v33 = vrot.slane %v3537_v28, %v3504_v49 }
 0x310   :  { %v2853_v35 = vpop.f32.mrf.mxu1 }
 0x311   :  { %v408_v37 = vadd.f32 %v2853_v35, %v352_v34 }
 0x312   :  { %v399_v38 = vpop.f32.mrf.mxu1 }
 0x313   :  { %v400_v39 = vadd.f32 %v399_v38, %v352_v34  ;;  %v423_v40 = vadd.f32 %v419_v36, %v408_v37 }
 0x314   :  { %v2854_v41 = vpop.f32.mrf.mxu1 }
 0x315   :  { %v445_v42 = vsel %vm438_vm6, %v423_v40, 0.0  ;;  %v421_v43 = vadd.f32 %v419_v36, %v400_v39  ;;  %v411_v45 = vadd.f32 %v2854_v41, %v352_v34  ;;  %v503_v39 = vrot.slane %v3537_v28, %v3509_v56 }
 0x316   :  { %v402_v44 = vpop.f32.mrf.mxu1  ;;  %446 = vadd.xlane.f32.xlu0 %v445_v42 }
 0x317   :  { %v403_v46 = vadd.f32 %v402_v44, %v352_v34  ;;  %v439_v47 = vsel %vm438_vm6, %v421_v43, 0.0  ;;  %v424_v51 = vadd.f32 %v419_v36, %v411_v45 }
 0x318   :  { %440 = vadd.xlane.f32.xlu1 %v439_v47 }
 0x319   :  { %v422_v48 = vadd.f32 %v419_v36, %v403_v46  ;;  %v448_v52 = vsel %vm438_vm6, %v424_v51, 0.0 }
 0x31b   :  { %v442_v50 = vsel %vm438_vm6, %v422_v48, 0.0 }
 0x31c   :  { %443 = vadd.xlane.f32.xlu1 %v442_v50 }
 0x320   :  { %449 = vadd.xlane.f32.xlu1 %v448_v52 }
 0x39f   :  { %v447_v53 = vpop.xlane.xlu0 %446 }
 0x3a0   :  { %v454_v54 = vmul.f32 0.03125, %v447_v53 }
 0x3a1   :  { %v441_v55 = vpop.xlane.xlu1 %440 }
 0x3a2   :  { %v452_v57 = vmul.f32 0.03125, %v441_v55  ;;  %v458_v58 = vsub.f32 %v423_v40, %v454_v54 }
 0x3a4   :  { %v456_v63 = vsub.f32 %v421_v43, %v452_v57  ;;  %v462_v10 = vmul.f32 %v458_v58, %v458_v58 }
 0x3a5   :  { %v444_v1 = vpop.xlane.xlu1 %443 }
 0x3a6   :  { %v453_v2 = vmul.f32 0.03125, %v444_v1  ;;  %v460_v3 = vmul.f32 %v456_v63, %v456_v63  ;;  %v470_v15 = vsel %vm438_vm6, %v462_v10, 0.0 }
 0x3a8   :  { %v457_v4 = vsub.f32 %v422_v48, %v453_v2  ;;  %v464_v9 = vsel %vm438_vm6, %v460_v3, 0.0 }
 0x3a9   :  { %465 = vadd.xlane.f32.xlu0 %v464_v9  ;;  %v450_v11 = vpop.xlane.xlu1 %449  ;;  %v3573_v9 = vld [vmem:[#allocation7] sm:$0xff] }
 0x3aa   :  { %v455_v12 = vmul.f32 0.03125, %v450_v11  ;;  %v461_v13 = vmul.f32 %v457_v4, %v457_v4  ;;  %v3575_v11 = vld [vmem:[#allocation7 + $0x18] sm:$0xff] }
 0x3ac   :  { %v459_v14 = vsub.f32 %v424_v51, %v455_v12  ;;  %v467_v59 = vsel %vm438_vm6, %v461_v13, 0.0 }
 0x3ad   :  { %471 = vadd.xlane.f32.xlu0 %v470_v15  ;;  %468 = vadd.xlane.f32.xlu1 %v467_v59 }
 0x3ae   :  { %v463_v60 = vmul.f32 %v459_v14, %v459_v14 }
 0x3b0   :  { %v473_v16 = vsel %vm438_vm6, %v463_v60, 0.0  ;;  %v3582_v60 = vld [vmem:[#allocation7 + $0x10] sm:$0xff] }
 0x3b1   :  { %474 = vadd.xlane.f32.xlu1 %v473_v16 }
 0x432   :  { %v466_v18 = vpop.xlane.xlu0 %465 }
 0x433   :  { %v476_v61 = vmul.f32 0.03125, %v466_v18 }
 0x435   :  { %v480_v19 = vadd.f32 1e-05, %v476_v61 }
 0x436   :  { %v472_v62 = vpop.xlane.xlu0 %471  ;;  %v469_v21 = vpop.xlane.xlu1 %468 }
 0x437   :  { %3079 = vrsqrt.f32 %v480_v19  ;;  %v478_v8 = vmul.f32 0.03125, %v472_v62  ;;  %v477_v22 = vmul.f32 0.03125, %v469_v21 }
 0x439   :  { %v482_v23 = vadd.f32 1e-05, %v478_v8  ;;  %v481_v24 = vadd.f32 1e-05, %v477_v22 }
 0x43a   :  { %v475_v25 = vpop.xlane.xlu1 %474 }
 0x43b   :  { %3081 = vrsqrt.f32 %v482_v23  ;;  %v479_v26 = vmul.f32 0.03125, %v475_v25 }
 0x43c   :  { %3083 = vrsqrt.f32 %v481_v24 }
 0x43d   :  { %v483_v27 = vadd.f32 1e-05, %v479_v26 }
 0x43f   :  { %3085 = vrsqrt.f32 %v483_v27 }
 0x444   :  { %v3080_v29 = vpop.eup %3079 }
 0x445   :  { %v488_v32 = vmul.f32 %v3080_v29, %v456_v63 }
 0x447   :  { %v496_v38 = vmul.f32 %v495_v33, %v488_v32 }
 0x448   :  { %v3082_v34 = vpop.eup %3081 }
 0x449   :  { %v3084_v35 = vpop.eup %3083  ;;  %v490_v36 = vmul.f32 %v3082_v34, %v458_v58  ;;  %v3543_v44 = vadd.f32 %v503_v39, %v496_v38 }
 0x44a   :  { %v489_v37 = vmul.f32 %v3084_v35, %v457_v4 }
 0x44b   :  { %v498_v43 = vmul.f32 %v495_v33, %v490_v36 }
 0x44c   :  { %v3086_v40 = vpop.eup %3085  ;;  %v497_v41 = vmul.f32 %v495_v33, %v489_v37 }
 0x44d   :  { %v491_v42 = vmul.f32 %v3086_v40, %v459_v14  ;;  %v3549_v48 = vadd.f32 %v503_v39, %v498_v43  ;;  %v3578_v14 = vld [vmem:[#allocation7 + $0x8] sm:$0xff] }
 0x44e   :  { %v3545_v45 = vadd.f32 %v503_v39, %v497_v41 }
 0x44f   :  { %v499_v46 = vmul.f32 %v495_v33, %v491_v42 }
 0x450   :  { %v508_v47 = vpack.c.bf16 %v3545_v45, %v3543_v44 }
 0x451   :  { %v3551_v50 = vadd.f32 %v503_v39, %v499_v46 }
 0x452   :  { %2859 = vmatprep.mubr.msk.bf16.mxu0 %vm438_vm6, %v508_v47 }
 0x453   :  { %v509_v51 = vpack.c.bf16 %v3551_v50, %v3549_v48 }
 0x455   :  { %2860 = vmatmul.mubr.msk.bf16.vlgmr.msra.gmra.mxu0 %vm438_vm6, %v509_v51 }
 0x515   :  { %v2861_v52 = vpop.f32.mrf.mxu0 }
 0x517   :  { %v562_v53 = vpop.f32.mrf.mxu0 }
 0x519   :  { %v2862_v54 = vpop.f32.mrf.mxu0 }
 0x51a   :  { %v3557_v55 = vpack.c.bf16 %v2862_v54, %v2861_v52 }
 0x51b   :  { %v565_v57 = vpop.f32.mrf.mxu0 }
 0x51c   :  { %v3559_v58 = vpack.c.bf16 %v565_v57, %v562_v53  ;;  %583 = vrot.lane.b32.xlu0 %v3557_v55, %s3359_s3 }
 0x51e   :  { %581 = vrot.lane.b32.xlu1 %v3559_v58, %s3359_s3  ;;  %2867 = vmatprep.mubr.msk.bf16.mxu1 %vm234_vm2, %v3559_v58 }
 0x58e   :  { %v584_v63 = vpop.permute.xlu0 %583 }
 0x58f   :  { %3015 = vmatprep.subr.msk.bf16.mxu1 %vm234_vm2, %v584_v63  ;;  %v595_v1 = vsel %vm234_vm2, %v584_v63, 0 }
 0x590   :  { %2864 = vmatpush3.bf16.xpose.msra.mxu1 %v595_v1  ;;  %v582_v2 = vpop.permute.xlu1 %581 }
 0x591   :  { %3016 = vmatprep.subr.msk.bf16.mxu1 %vm234_vm2, %v582_v2  ;;  %v592_v3 = vsel %vm234_vm2, %v582_v2, 0 }
 0x598   :  { %2866 = vmatpush3.bf16.xpose.msra.mxu1 %v592_v3 }
 0x59f   :  { %2868 = vmatmul.mubr.msk.bf16.vlgmr.msra.gmra.mxu1 %vm234_vm2, %v3557_v55 }
 0x65f   :  { %v2869_v4 = vpop.f32.mrf.mxu1 }
 0x660   :  { %v640_v17 = vadd.f32 %v2869_v4, %v3582_v60 }
 0x661   :  { %v631_v10 = vpop.f32.mrf.mxu1 }
 0x662   :  { %v632_v12 = vadd.f32 %v631_v10, %v3573_v9  ;;  %v652_v19 = vsel %vm438_vm6, %v640_v17, -inf }
 0x663   :  { %v2870_v13 = vpop.f32.mrf.mxu1 }
 0x664   :  { %v643_v15 = vadd.f32 %v2870_v13, %v3575_v11  ;;  %v646_v59 = vsel %vm438_vm6, %v632_v12, -inf }
 0x665   :  { %v634_v16 = vpop.f32.mrf.mxu1  ;;  %647 = vmax.xlane.f32.xlu1 %v646_v59 }
 0x666   :  { %v635_v20 = vadd.f32 %v634_v16, %v3578_v14  ;;  %v655_v61 = vsel %vm438_vm6, %v643_v15, -inf }
 0x668   :  { %v649_v18 = vsel %vm438_vm6, %v635_v20, -inf }
 0x669   :  { %650 = vmax.xlane.f32.xlu0 %v649_v18  ;;  %656 = vmax.xlane.f32.xlu1 %v655_v61 }
 0x66d   :  { %653 = vmax.xlane.f32.xlu0 %v652_v19 }
 0x67a   :  { %692 = vrot.lane.b32.xlu1 %v3559_v58, %s3351_s27 }
 0x6ee   :  { %v648_v62 = vpop.xlane.xlu1 %647 }
 0x6ef   :  { %v658_v24 = vsub.f32 %v632_v12, %v648_v62 }
 0x6f1   :  { %v662_v32 = vmul.f32 1.442695, %v658_v24 }
 0x6f2   :  { %v651_v21 = vpop.xlane.xlu0 %650  ;;  %v657_v8 = vpop.xlane.xlu1 %656 }
 0x6f3   :  { %v659_v22 = vsub.f32 %v635_v20, %v651_v21  ;;  %v661_v23 = vsub.f32 %v643_v15, %v657_v8 }
 0x6f5   :  { %v668_v25 = vmul.f32 1.442695, %v661_v23  ;;  %v664_v26 = vmul.f32 1.442695, %v659_v22 }
 0x6f6   :  { %v654_v27 = vpop.xlane.xlu0 %653  ;;  %v3601_v42 = vpop.permute.xlu1 %692 }
 0x6f7   :  { %v660_v29 = vsub.f32 %v640_v17, %v654_v27  ;;  %3087 = vpow2.f32 %v668_v25 }
 0x6f8   :  { %3089 = vpow2.f32 %v664_v26 }
 0x6f9   :  { %v666_v33 = vmul.f32 1.442695, %v660_v29 }
 0x6fb   :  { %3091 = vpow2.f32 %v666_v33 }
 0x6fc   :  { %3093 = vpow2.f32 %v662_v32 }
 0x704   :  { %v3088_v34 = vpop.eup %3087 }
 0x705   :  { %v679_v35 = vsel %vm438_vm6, %v3088_v34, 0.0  ;;  %v3090_v36 = vpop.eup %3089 }
 0x706   :  { %680 = vadd.xlane.f32.xlu1 %v679_v35  ;;  %v673_v40 = vsel %vm438_vm6, %v3090_v36, 0.0 }
 0x708   :  { %v3092_v37 = vpop.eup %3091 }
 0x709   :  { %v676_v38 = vsel %vm438_vm6, %v3092_v37, 0.0  ;;  %v3094_v39 = vpop.eup %3093 }
 0x70a   :  { %677 = vadd.xlane.f32.xlu0 %v676_v38  ;;  %674 = vadd.xlane.f32.xlu1 %v673_v40  ;;  %v670_v41 = vsel %vm438_vm6, %v3094_v39, 0.0 }
 0x70e   :  { %671 = vadd.xlane.f32.xlu0 %v670_v41 }
 0x71b   :  { %771 = vrot.lane.b32.xlu1 %v3557_v55, %s3360_s4 }
 0x71f   :  { %769 = vrot.lane.b32.xlu1 %v3559_v58, %s3360_s4 }
 0x723   :  { %767 = vrot.lane.b32.xlu1 %v3557_v55, %s3361_s29 }
 0x724   :  { %694 = vrot.lane.b32.xlu0 %v3557_v55, %s3351_s27 }
 0x728   :  { %765 = vrot.lane.b32.xlu0 %v3559_v58, %s3361_s29 }
 0x78f   :  { %v681_v43 = vpop.xlane.xlu1 %680 }
 0x793   :  { %v678_v46 = vpop.xlane.xlu0 %677  ;;  %v675_v47 = vpop.xlane.xlu1 %674 }
 0x794   :  { %3095 = vrcp.f32 %v678_v46 }
 0x795   :  { %3097 = vrcp.f32 %v675_v47 }
 0x796   :  { %3099 = vrcp.f32 %v681_v43 }
 0x797   :  { %v672_v51 = vpop.xlane.xlu0 %671  ;;  %v772_v53 = vpop.permute.xlu1 %771 }
 0x798   :  { %3101 = vrcp.f32 %v672_v51  ;;  %v783_v15 = vsel %vm234_vm2, %v772_v53, 0 }
 0x79b   :  { %v3603_v52 = vpop.permute.xlu0 %694  ;;  %v770_v16 = vpop.permute.xlu1 %769 }
 0x79c   :  { %2871 = vmatprep.subr.bf16.mxu0 %v3603_v52  ;;  %2887 = vmatprep.subr.bf16.mxu1 %v3603_v52  ;;  %v780_v20 = vsel %vm234_vm2, %v770_v16, 0 }
 0x79d   :  { %2872 = vmatpush3.bf16.msra.mxu0 %v3603_v52  ;;  %2888 = vmatpush3.bf16.msra.mxu1 %v3603_v52 }
 0x79e   :  { %2873 = vmatprep.subr.bf16.mxu0 %v3601_v42  ;;  %2889 = vmatprep.subr.bf16.mxu1 %v3601_v42 }
 0x79f   :  { %v766_v59 = vpop.permute.xlu0 %765  ;;  %v768_v17 = vpop.permute.xlu1 %767 }
 0x7a1   :  { %2874 = vmatpush3.bf16.msra.mxu0 %v3601_v42  ;;  %2890 = vmatpush3.bf16.msra.mxu1 %v3601_v42  ;;  %v3096_v54 = vpop.eup %3095 }
 0x7a2   :  { %3017 = vmatprep.subr.msk.bf16.mxu0 %vm234_vm2, %v772_v53  ;;  %v3098_v57 = vpop.eup %3097  ;;  %v688_v2 = vmul.f32 %v3096_v54, %v3092_v37 }
 0x7a3   :  { %v3100_v63 = vpop.eup %3099  ;;  %v687_v4 = vmul.f32 %v3098_v57, %v3090_v36 }
 0x7a4   :  { %v689_v10 = vmul.f32 %v3100_v63, %v3088_v34 }
 0x7a5   :  { %v3102_v1 = vpop.eup %3101 }
 0x7a6   :  { %v686_v3 = vmul.f32 %v3102_v1, %v3094_v39  ;;  %v691_v13 = vpack.c.bf16 %v689_v10, %v688_v2 }
 0x7a8   :  { %v690_v12 = vpack.c.bf16 %v687_v4, %v686_v3 }
 0x7aa   :  { %2875 = vmatprep.mubr.msk.bf16.mxu0 %vm438_vm6, %v690_v12 }
 0x7ab   :  { %2876 = vmatmul.mubr.msk.bf16.vlgmr.msra.gmra.mxu0 %vm438_vm6, %v691_v13 }
 0x7ac   :  { %2880 = vmatpush3.bf16.xpose.msra.mxu0 %v783_v15  ;;  %2883 = vmatprep.mubr.msk.bf16.mxu0 %vm234_vm2, %v766_v59 }
 0x7ad   :  { %3018 = vmatprep.subr.msk.bf16.mxu0 %vm234_vm2, %v770_v16 }
 0x7b4   :  { %2882 = vmatpush3.bf16.xpose.msra.mxu0 %v780_v20 }
 0x7b5   :  { %2903 = vmatprep.subr.bf16.mxu0 %v3603_v52 }
 0x7bb   :  { %2884 = vmatmul.mubr.msk.bf16.vlgmr.msra.gmra.mxu0 %vm234_vm2, %v768_v17 }
 0x7bc   :  { %2904 = vmatpush3.bf16.msra.mxu0 %v3603_v52 }
 0x7bd   :  { %2905 = vmatprep.subr.bf16.mxu0 %v3601_v42 }
 0x7c0   :  { %2906 = vmatpush3.bf16.msra.mxu0 %v3601_v42 }
 0x86b   :  { %v3625_v18 = vpop.f32.mrf.mxu0 }
 0x86d   :  { %v3627_v61 = vpop.f32.mrf.mxu0 }
 0x86f   :  { %v3629_v19 = vpop.f32.mrf.mxu0 }
 0x871   :  { %v3631_v62 = vpop.f32.mrf.mxu0 }
 0x87b   :  { %v2885_v21 = vpop.f32.mrf.mxu0 }
 0x87c   :  { %v828_v24 = vadd.f32 %v2885_v21, %v3582_v60 }
 0x87d   :  { %v819_v8 = vpop.f32.mrf.mxu0 }
 0x87e   :  { %v820_v22 = vadd.f32 %v819_v8, %v3573_v9  ;;  %v840_v33 = vsel %vm438_vm6, %v828_v24, -inf }
 0x87f   :  { %v2886_v23 = vpop.f32.mrf.mxu0 }
 0x880   :  { %v834_v25 = vsel %vm438_vm6, %v820_v22, -inf  ;;  %v831_v29 = vadd.f32 %v2886_v23, %v3575_v11 }
 0x881   :  { %v822_v26 = vpop.f32.mrf.mxu0  ;;  %835 = vmax.xlane.f32.xlu0 %v834_v25 }
 0x882   :  { %v823_v27 = vadd.f32 %v822_v26, %v3578_v14  ;;  %v843_v34 = vsel %vm438_vm6, %v831_v29, -inf }
 0x884   :  { %v837_v32 = vsel %vm438_vm6, %v823_v27, -inf }
 0x885   :  { %838 = vmax.xlane.f32.xlu1 %v837_v32  ;;  %841 = vmax.xlane.f32.xlu0 %v840_v33 }
 0x889   :  { %844 = vmax.xlane.f32.xlu0 %v843_v34 }
 0x90a   :  { %v836_v35 = vpop.xlane.xlu0 %835 }
 0x90b   :  { %v846_v36 = vsub.f32 %v820_v22, %v836_v35 }
 0x90d   :  { %v850_v46 = vmul.f32 1.442695, %v846_v36  ;;  %v755_v36 = vsub.s32 5, %v3469_v6 }
 0x90e   :  { %v839_v37 = vpop.xlane.xlu1 %838  ;;  %v842_v38 = vpop.xlane.xlu0 %841 }
 0x90f   :  { %v847_v39 = vsub.f32 %v823_v27, %v839_v37  ;;  %v848_v40 = vsub.f32 %v828_v24, %v842_v38  ;;  %v937_v37 = vsub.s32 6, %v3469_v6  ;;  %v756_v38 = vrot.slane %v3524_v31, %v755_v36 }
 0x911   :  { %v852_v41 = vmul.f32 1.442695, %v847_v39  ;;  %v854_v43 = vmul.f32 1.442695, %v848_v40  ;;  %v938_v39 = vrot.slane %v3524_v31, %v937_v37 }
 0x912   :  { %v845_v47 = vpop.xlane.xlu0 %844 }
 0x913   :  { %3103 = vpow2.f32 %v852_v41  ;;  %v849_v51 = vsub.f32 %v831_v29, %v845_v47  ;;  %v759_v41 = vmul.f32 %v3625_v18, %v756_v38 }
 0x914   :  { %3105 = vpow2.f32 %v854_v43 }
 0x915   :  { %v856_v53 = vmul.f32 1.442695, %v849_v51  ;;  %3107 = vpow2.f32 %v850_v46  ;;  %v757_v46 = vmul.f32 %v756_v38, %v3627_v61 }
 0x917   :  { %3109 = vpow2.f32 %v856_v53  ;;  %v760_v53 = vmul.f32 %v3629_v19, %v756_v38 }
 0x920   :  { %v3104_v54 = vpop.eup %3103 }
 0x921   :  { %v3106_v57 = vpop.eup %3105  ;;  %v861_v63 = vsel %vm438_vm6, %v3104_v54, 0.0 }
 0x922   :  { %862 = vadd.xlane.f32.xlu1 %v861_v63  ;;  %v864_v1 = vsel %vm438_vm6, %v3106_v57, 0.0  ;;  %v3108_v2 = vpop.eup %3107 }
 0x923   :  { %865 = vadd.xlane.f32.xlu0 %v864_v1  ;;  %v858_v10 = vsel %vm438_vm6, %v3108_v2, 0.0  ;;  %v758_v1 = vmul.f32 %v756_v38, %v3631_v62 }
 0x924   :  { %v3110_v3 = vpop.eup %3109 }
 0x925   :  { %v867_v4 = vsel %vm438_vm6, %v3110_v3, 0.0 }
 0x926   :  { %868 = vadd.xlane.f32.xlu1 %v867_v4 }
 0x927   :  { %859 = vadd.xlane.f32.xlu0 %v858_v10 }
 0x937   :  { %951 = vrot.lane.b32.xlu1 %v3559_v58, %s3362_s30 }
 0x93b   :  { %947 = vrot.lane.b32.xlu1 %v3559_v58, %s3363_s12 }
 0x93d   :  { %953 = vrot.lane.b32.xlu0 %v3557_v55, %s3362_s30 }
 0x93f   :  { %949 = vrot.lane.b32.xlu1 %v3557_v55, %s3363_s12 }
 0x9ab   :  { %v863_v12 = vpop.xlane.xlu1 %862 }
 0x9ac   :  { %v866_v13 = vpop.xlane.xlu0 %865 }
 0x9ad   :  { %3111 = vrcp.f32 %v866_v13 }
 0x9ae   :  { %3113 = vrcp.f32 %v863_v12 }
 0x9af   :  { %v869_v15 = vpop.xlane.xlu1 %868 }
 0x9b0   :  { %3115 = vrcp.f32 %v869_v15  ;;  %v860_v59 = vpop.xlane.xlu0 %859 }
 0x9b1   :  { %3117 = vrcp.f32 %v860_v59 }
 0x9b3   :  { %v952_v22 = vpop.permute.xlu1 %951 }
 0x9b4   :  { %v954_v16 = vpop.permute.xlu0 %953  ;;  %v962_v34 = vsel %vm234_vm2, %v952_v22, 0 }
 0x9b5   :  { %3019 = vmatprep.subr.msk.bf16.mxu1 %vm234_vm2, %v954_v16  ;;  %v965_v32 = vsel %vm234_vm2, %v954_v16, 0 }
 0x9b7   :  { %v948_v33 = vpop.permute.xlu1 %947 }
 0x9ba   :  { %v3112_v20 = vpop.eup %3111 }
 0x9bb   :  { %v3114_v17 = vpop.eup %3113  ;;  %v876_v23 = vmul.f32 %v3112_v20, %v3106_v57  ;;  %v950_v35 = vpop.permute.xlu1 %949 }
 0x9bc   :  { %v875_v26 = vmul.f32 %v3114_v17, %v3104_v54 }
 0x9bd   :  { %v3116_v21 = vpop.eup %3115 }
 0x9be   :  { %v3118_v8 = vpop.eup %3117  ;;  %v877_v24 = vmul.f32 %v3116_v21, %v3110_v3 }
 0x9bf   :  { %v874_v25 = vmul.f32 %v3118_v8, %v3108_v2 }
 0x9c0   :  { %v879_v27 = vpack.c.bf16 %v877_v24, %v876_v23 }
 0x9c1   :  { %v878_v29 = vpack.c.bf16 %v875_v26, %v874_v25 }
 0x9c3   :  { %2891 = vmatprep.mubr.msk.bf16.mxu1 %vm438_vm6, %v878_v29 }
 0x9c4   :  { %2892 = vmatmul.mubr.msk.bf16.vlgmr.msra.gmra.mxu1 %vm438_vm6, %v879_v27 }
 0x9c5   :  { %2896 = vmatpush3.bf16.xpose.msra.mxu1 %v965_v32  ;;  %2899 = vmatprep.mubr.msk.bf16.mxu1 %vm234_vm2, %v948_v33 }
 0x9c6   :  { %3020 = vmatprep.subr.msk.bf16.mxu1 %vm234_vm2, %v952_v22 }
 0x9cd   :  { %2898 = vmatpush3.bf16.xpose.msra.mxu1 %v962_v34 }
 0x9ce   :  { %2919 = vmatprep.subr.bf16.mxu1 %v3603_v52 }
 0x9d4   :  { %2900 = vmatmul.mubr.msk.bf16.vlgmr.msra.gmra.mxu1 %vm234_vm2, %v950_v35 }
 0x9d5   :  { %2920 = vmatpush3.bf16.msra.mxu1 %v3603_v52 }
 0x9d6   :  { %2921 = vmatprep.subr.bf16.mxu1 %v3601_v42 }
 0x9d9   :  { %2922 = vmatpush3.bf16.msra.mxu1 %v3601_v42 }
 0xa84   :  { %v2893_v40 = vpop.f32.mrf.mxu1 }
 0xa85   :  { %v941_v52 = vmul.f32 %v2893_v40, %v938_v39 }
 0xa86   :  { %v920_v43 = vpop.f32.mrf.mxu1 }
 0xa87   :  { %v3675_v42 = vadd.f32 %v941_v52, %v759_v41  ;;  %v939_v47 = vmul.f32 %v938_v39, %v920_v43 }
 0xa88   :  { %v2894_v51 = vpop.f32.mrf.mxu1 }
 0xa89   :  { %v3678_v54 = vadd.f32 %v939_v47, %v757_v46  ;;  %v942_v57 = vmul.f32 %v2894_v51, %v938_v39 }
 0xa8a   :  { %v923_v63 = vpop.f32.mrf.mxu1 }
 0xa8b   :  { %v3681_v2 = vadd.f32 %v942_v57, %v760_v53  ;;  %v940_v3 = vmul.f32 %v938_v39, %v923_v63 }
 0xa8d   :  { %v3683_v18 = vadd.f32 %v940_v3, %v758_v1 }
 0xa94   :  { %v2901_v4 = vpop.f32.mrf.mxu1 }
 0xa95   :  { %v1010_v13 = vadd.f32 %v2901_v4, %v3582_v60 }
 0xa96   :  { %v1001_v10 = vpop.f32.mrf.mxu1 }
 0xa97   :  { %v1002_v61 = vadd.f32 %v1001_v10, %v3573_v9  ;;  %v1022_v20 = vsel %vm438_vm6, %v1010_v13, -inf }
 0xa98   :  { %v2902_v12 = vpop.f32.mrf.mxu1 }
 0xa99   :  { %v1016_v19 = vsel %vm438_vm6, %v1002_v61, -inf  ;;  %v1013_v62 = vadd.f32 %v2902_v12, %v3575_v11 }
 0xa9a   :  { %v1004_v15 = vpop.f32.mrf.mxu1  ;;  %1017 = vmax.xlane.f32.xlu0 %v1016_v19 }
 0xa9b   :  { %v1005_v59 = vadd.f32 %v1004_v15, %v3578_v14  ;;  %v1025_v17 = vsel %vm438_vm6, %v1013_v62, -inf }
 0xa9d   :  { %v1019_v16 = vsel %vm438_vm6, %v1005_v59, -inf }
 0xa9e   :  { %1020 = vmax.xlane.f32.xlu1 %v1019_v16  ;;  %1023 = vmax.xlane.f32.xlu0 %v1022_v20 }
 0xaa2   :  { %1026 = vmax.xlane.f32.xlu0 %v1025_v17  ;;  %v3710_v17 = vsub.s32 7, %v3469_v6 }
 0xb23   :  { %v1018_v21 = vpop.xlane.xlu0 %1017 }
 0xb24   :  { %v1028_v8 = vsub.f32 %v1002_v61, %v1018_v21  ;;  %v1120_v21 = vrot.slane %v3524_v31, %v3710_v17 }
 0xb26   :  { %v1032_v29 = vmul.f32 1.442695, %v1028_v8 }
 0xb27   :  { %v1021_v22 = vpop.xlane.xlu1 %1020  ;;  %v1024_v23 = vpop.xlane.xlu0 %1023 }
 0xb28   :  { %v1029_v24 = vsub.f32 %v1005_v59, %v1021_v22  ;;  %v1030_v25 = vsub.f32 %v1010_v13, %v1024_v23 }
 0xb2a   :  { %v1034_v26 = vmul.f32 1.442695, %v1029_v24  ;;  %v1036_v27 = vmul.f32 1.442695, %v1030_v25 }
 0xb2b   :  { %v1027_v32 = vpop.xlane.xlu0 %1026 }
 0xb2c   :  { %3119 = vpow2.f32 %v1034_v26  ;;  %v1031_v33 = vsub.f32 %v1013_v62, %v1027_v32 }
 0xb2d   :  { %3121 = vpow2.f32 %v1036_v27 }
 0xb2e   :  { %v1038_v34 = vmul.f32 1.442695, %v1031_v33  ;;  %3123 = vpow2.f32 %v1032_v29 }
 0xb30   :  { %3125 = vpow2.f32 %v1038_v34 }
 0xb39   :  { %v3120_v35 = vpop.eup %3119 }
 0xb3a   :  { %v3122_v38 = vpop.eup %3121  ;;  %v1043_v39 = vsel %vm438_vm6, %v3120_v35, 0.0 }
 0xb3b   :  { %1044 = vadd.xlane.f32.xlu1 %v1043_v39  ;;  %v1046_v40 = vsel %vm438_vm6, %v3122_v38, 0.0  ;;  %v3124_v41 = vpop.eup %3123 }
 0xb3c   :  { %1047 = vadd.xlane.f32.xlu0 %v1046_v40  ;;  %v1040_v46 = vsel %vm438_vm6, %v3124_v41, 0.0 }
 0xb3d   :  { %v3126_v52 = vpop.eup %3125 }
 0xb3e   :  { %v1049_v43 = vsel %vm438_vm6, %v3126_v52, 0.0 }
 0xb3f   :  { %1050 = vadd.xlane.f32.xlu1 %v1049_v43 }
 0xb40   :  { %1041 = vadd.xlane.f32.xlu0 %v1040_v46 }
 0xb50   :  { %1133 = vrot.lane.b32.xlu1 %v3559_v58, %s3364_s13 }
 0xb54   :  { %1129 = vrot.lane.b32.xlu1 %v3559_v58, %s3365_s14 }
 0xb56   :  { %1135 = vrot.lane.b32.xlu0 %v3557_v55, %s3364_s13 }
 0xb58   :  { %1131 = vrot.lane.b32.xlu1 %v3557_v55, %s3365_s14 }
 0xbc4   :  { %v1045_v47 = vpop.xlane.xlu1 %1044 }
 0xbc5   :  { %v1048_v51 = vpop.xlane.xlu0 %1047 }
 0xbc6   :  { %3127 = vrcp.f32 %v1048_v51 }
 0xbc7   :  { %3129 = vrcp.f32 %v1045_v47 }
 0xbc8   :  { %v1051_v53 = vpop.xlane.xlu1 %1050 }
 0xbc9   :  { %3131 = vrcp.f32 %v1051_v53  ;;  %v1042_v57 = vpop.xlane.xlu0 %1041 }
 0xbca   :  { %3133 = vrcp.f32 %v1042_v57 }
 0xbcc   :  { %v1134_v58 = vpop.permute.xlu1 %1133 }
 0xbcd   :  { %v1136_v63 = vpop.permute.xlu0 %1135  ;;  %v1144_v16 = vsel %vm234_vm2, %v1134_v58, 0 }
 0xbce   :  { %3021 = vmatprep.subr.msk.bf16.mxu0 %vm234_vm2, %v1136_v63  ;;  %v1147_v59 = vsel %vm234_vm2, %v1136_v63, 0 }
 0xbd0   :  { %v1130_v62 = vpop.permute.xlu1 %1129 }
 0xbd3   :  { %v3128_v1 = vpop.eup %3127 }
 0xbd4   :  { %v3130_v3 = vpop.eup %3129  ;;  %v1058_v61 = vmul.f32 %v3128_v1, %v3122_v38  ;;  %v1132_v20 = vpop.permute.xlu1 %1131 }
 0xbd5   :  { %v1057_v55 = vmul.f32 %v3130_v3, %v3120_v35 }
 0xbd6   :  { %v3132_v4 = vpop.eup %3131 }
 0xbd7   :  { %v3134_v10 = vpop.eup %3133  ;;  %v1059_v12 = vmul.f32 %v3132_v4, %v3126_v52 }
 0xbd8   :  { %v1056_v13 = vmul.f32 %v3134_v10, %v3124_v41 }
 0xbd9   :  { %v1061_v19 = vpack.c.bf16 %v1059_v12, %v1058_v61 }
 0xbda   :  { %v1060_v15 = vpack.c.bf16 %v1057_v55, %v1056_v13 }
 0xbdc   :  { %2907 = vmatprep.mubr.msk.bf16.mxu0 %vm438_vm6, %v1060_v15 }
 0xbdd   :  { %2908 = vmatmul.mubr.msk.bf16.vlgmr.msra.gmra.mxu0 %vm438_vm6, %v1061_v19 }
 0xbde   :  { %2912 = vmatpush3.bf16.xpose.msra.mxu0 %v1147_v59  ;;  %2915 = vmatprep.mubr.msk.bf16.mxu0 %vm234_vm2, %v1130_v62 }
 0xbdf   :  { %3022 = vmatprep.subr.msk.bf16.mxu0 %vm234_vm2, %v1134_v58 }
 0xbe6   :  { %2914 = vmatpush3.bf16.xpose.msra.mxu0 %v1144_v16 }
 0xbed   :  { %2916 = vmatmul.mubr.msk.bf16.vlgmr.msra.gmra.mxu0 %vm234_vm2, %v1132_v20 }
 0xc9d   :  { %v2909_v8 = vpop.f32.mrf.mxu0 }
 0xc9e   :  { %v1123_v22 = vmul.f32 %v2909_v8, %v1120_v21 }
 0xc9f   :  { %v1102_v23 = vpop.f32.mrf.mxu0 }
 0xca0   :  { %v3715_v24 = vadd.f32 %v1123_v22, %v3675_v42  ;;  %v1121_v25 = vmul.f32 %v1120_v21, %v1102_v23 }
 0xca1   :  { %v2910_v26 = vpop.f32.mrf.mxu0 }
 0xca2   :  { %v3718_v27 = vadd.f32 %v1121_v25, %v3678_v54  ;;  %v1124_v29 = vmul.f32 %v2910_v26, %v1120_v21 }
 0xca3   :  { %v1105_v32 = vpop.f32.mrf.mxu0 }
 0xca4   :  { %v3721_v33 = vadd.f32 %v1124_v29, %v3681_v2  ;;  %v1122_v34 = vmul.f32 %v1120_v21, %v1105_v32 }
 0xca6   :  { %v3724_v35 = vadd.f32 %v1122_v34, %v3683_v18 }
 0xcad   :  { %v2917_v31 = vpop.f32.mrf.mxu0 }
 0xcae   :  { %v1192_v40 = vadd.f32 %v2917_v31, %v3582_v60 }
 0xcaf   :  { %v1183_v38 = vpop.f32.mrf.mxu0 }
 0xcb0   :  { %v1184_v39 = vadd.f32 %v1183_v38, %v3573_v9  ;;  %v1204_v18 = vsel %vm438_vm6, %v1192_v40, -inf  ;;  %v3740_v38 = vld [vmem:[#allocation5 + $0x18] sm:$0x7] }
 0xcb1   :  { %v2918_v42 = vpop.f32.mrf.mxu0 }
 0xcb2   :  { %v1198_v41 = vsel %vm438_vm6, %v1184_v39, -inf  ;;  %v1195_v2 = vadd.f32 %v2918_v42, %v3575_v11 }
 0xcb3   :  { %v1186_v54 = vpop.f32.mrf.mxu0  ;;  %1199 = vmax.xlane.f32.xlu0 %v1198_v41 }
 0xcb4   :  { %v1187_v52 = vadd.f32 %v1186_v54, %v3578_v14  ;;  %v1207_v46 = vsel %vm438_vm6, %v1195_v2, -inf }
 0xcb6   :  { %v1201_v43 = vsel %vm438_vm6, %v1187_v52, -inf }
 0xcb7   :  { %1202 = vmax.xlane.f32.xlu1 %v1201_v43  ;;  %1205 = vmax.xlane.f32.xlu0 %v1204_v18 }
 0xcbb   :  { %1208 = vmax.xlane.f32.xlu0 %v1207_v46 }
 0xd3c   :  { %v1200_v9 = vpop.xlane.xlu0 %1199 }
 0xd3d   :  { %v1210_v47 = vsub.f32 %v1184_v39, %v1200_v9  ;;  %v1302_v39 = vrot.slane %v3740_v38, %v3504_v49 }
 0xd3f   :  { %v1214_v60 = vmul.f32 1.442695, %v1210_v47 }
 0xd40   :  { %v1203_v51 = vpop.xlane.xlu1 %1202  ;;  %v1206_v53 = vpop.xlane.xlu0 %1205 }
 0xd41   :  { %3135 = vpow2.f32 %v1214_v60  ;;  %v1211_v57 = vsub.f32 %v1187_v52, %v1203_v51  ;;  %v1212_v63 = vsub.f32 %v1192_v40, %v1206_v53 }
 0xd43   :  { %v1216_v14 = vmul.f32 1.442695, %v1211_v57  ;;  %v1218_v1 = vmul.f32 1.442695, %v1212_v63 }
 0xd44   :  { %v1209_v11 = vpop.xlane.xlu0 %1208 }
 0xd45   :  { %3137 = vpow2.f32 %v1216_v14  ;;  %v1213_v3 = vsub.f32 %v1195_v2, %v1209_v11 }
 0xd46   :  { %3139 = vpow2.f32 %v1218_v1 }
 0xd47   :  { %v1220_v4 = vmul.f32 1.442695, %v1213_v3 }
 0xd49   :  { %3141 = vpow2.f32 %v1220_v4 }
 0xd4e   :  { %v3136_v10 = vpop.eup %3135 }
 0xd4f   :  { %v1222_v58 = vsel %vm438_vm6, %v3136_v10, 0.0 }
 0xd50   :  { %1223 = vadd.xlane.f32.xlu0 %v1222_v58 }
 0xd52   :  { %v3138_v61 = vpop.eup %3137 }
 0xd53   :  { %v3140_v12 = vpop.eup %3139  ;;  %v1225_v13 = vsel %vm438_vm6, %v3138_v61, 0.0 }
 0xd54   :  { %1226 = vadd.xlane.f32.xlu1 %v1225_v13  ;;  %v1228_v55 = vsel %vm438_vm6, %v3140_v12, 0.0 }
 0xd55   :  { %1229 = vadd.xlane.f32.xlu0 %v1228_v55 }
 0xd56   :  { %v3142_v19 = vpop.eup %3141 }
 0xd57   :  { %v1231_v15 = vsel %vm438_vm6, %v3142_v19, 0.0 }
 0xd58   :  { %1232 = vadd.xlane.f32.xlu1 %v1231_v15 }
 0xdd9   :  { %v1224_v59 = vpop.xlane.xlu0 %1223 }
 0xdda   :  { %3143 = vrcp.f32 %v1224_v59 }
 0xddd   :  { %v1227_v62 = vpop.xlane.xlu1 %1226 }
 0xdde   :  { %3145 = vrcp.f32 %v1227_v62  ;;  %v1230_v16 = vpop.xlane.xlu0 %1229 }
 0xddf   :  { %3147 = vrcp.f32 %v1230_v16 }
 0xde1   :  { %v1233_v20 = vpop.xlane.xlu1 %1232 }
 0xde2   :  { %3149 = vrcp.f32 %v1233_v20  ;;  %v3053_v20 = vld [vmem:[#allocation10 + $0x8] sm:$0xff]  }
 0xde3   :  { %2927 = vmatprep.subr.bf16.mxu1 %v3053_v20 }
 0xde7   :  { %v3144_v21 = vpop.eup %3143 }
 0xde8   :  { %v1238_v22 = vmul.f32 %v3144_v21, %v3136_v10  ;;  %v3054_v21 = vld [vmem:[#allocation10] sm:$0xff]  }
 0xdeb   :  { %v3146_v8 = vpop.eup %3145 }
 0xdec   :  { %v1239_v23 = vmul.f32 %v3146_v8, %v3138_v61  ;;  %v3148_v25 = vpop.eup %3147 }
 0xded   :  { %v1240_v32 = vmul.f32 %v3148_v25, %v3140_v12 }
 0xdee   :  { %v1242_v26 = vpack.c.bf16 %v1239_v23, %v1238_v22 }
 0xdef   :  { %v3150_v29 = vpop.eup %3149 }
 0xdf0   :  { %2923 = vmatprep.mubr.msk.bf16.mxu1 %vm438_vm6, %v1242_v26  ;;  %v1241_v34 = vmul.f32 %v3150_v29, %v3142_v19 }
 0xdf2   :  { %v1243_v31 = vpack.c.bf16 %v1241_v34, %v1240_v32 }
 0xdf4   :  { %2924 = vmatmul.mubr.msk.bf16.vlgmr.msra.gmra.mxu1 %vm438_vm6, %v1243_v31 }
 0xdf5   :  { %2928 = vmatpush3.bf16.msra.mxu1 %v3053_v20 }
 0xdf6   :  { %2929 = vmatprep.subr.bf16.mxu1 %v3054_v21 }
 0xdf9   :  { %2930 = vmatpush3.bf16.msra.mxu1 %v3054_v21 }
 0xeb4   :  { %v2925_v42 = vpop.f32.mrf.mxu1 }
 0xeb5   :  { %v1305_v40 = vmul.f32 %v2925_v42, %v1302_v39 }
 0xeb6   :  { %v1284_v41 = vpop.f32.mrf.mxu1 }
 0xeb7   :  { %v1303_v54 = vmul.f32 %v1302_v39, %v1284_v41  ;;  %v1309_v2 = vadd.f32 %v1305_v40, %v3715_v24 }
 0xeb8   :  { %v2926_v52 = vpop.f32.mrf.mxu1 }
 0xeb9   :  { %v1307_v43 = vadd.f32 %v1303_v54, %v3718_v27  ;;  %v1306_v18 = vmul.f32 %v2926_v52, %v1302_v39  ;;  %v1313_v57 = vadd.f32 %v1309_v2, %v3549_v48  ;;  %v1370_v52 = vrot.slane %v3537_v28, %v3472_v7 }
 0xeba   :  { %v1287_v46 = vpop.f32.mrf.mxu1  ;;  %v3763_v2 = vsub.s32 3, %v3469_v6 }
 0xebb   :  { %v1304_v9 = vmul.f32 %v1302_v39, %v1287_v46  ;;  %v1311_v47 = vadd.f32 %v1307_v43, %v3543_v44  ;;  %v1310_v60 = vadd.f32 %v1306_v18, %v3721_v33  ;;  %v1321_v24 = vsel %vm438_vm6, %v1313_v57, 0.0 }
 0xebd   :  { %v1308_v51 = vadd.f32 %v1304_v9, %v3724_v35  ;;  %v1315_v53 = vsel %vm438_vm6, %v1311_v47, 0.0  ;;  %v1314_v14 = vadd.f32 %v1310_v60, %v3551_v50  ;;  %v1378_v60 = vrot.slane %v3537_v28, %v3763_v2 }
 0xebe   :  { %1316 = vadd.xlane.f32.xlu0 %v1315_v53 }
 0xebf   :  { %v1312_v63 = vadd.f32 %v1308_v51, %v3545_v45  ;;  %v1324_v44 = vsel %vm438_vm6, %v1314_v14, 0.0 }
 0xec1   :  { %v1318_v27 = vsel %vm438_vm6, %v1312_v63, 0.0 }
 0xec2   :  { %1322 = vadd.xlane.f32.xlu0 %v1321_v24  ;;  %1319 = vadd.xlane.f32.xlu1 %v1318_v27 }
 0xec6   :  { %1325 = vadd.xlane.f32.xlu1 %v1324_v44 }
 0xf47   :  { %v1317_v33 = vpop.xlane.xlu0 %1316 }
 0xf48   :  { %v1327_v35 = vmul.f32 0.03125, %v1317_v33 }
 0xf4a   :  { %v1331_v1 = vsub.f32 %v1311_v47, %v1327_v35 }
 0xf4b   :  { %v1323_v11 = vpop.xlane.xlu0 %1322  ;;  %v1320_v3 = vpop.xlane.xlu1 %1319 }
 0xf4c   :  { %v1329_v48 = vmul.f32 0.03125, %v1323_v11  ;;  %v1328_v4 = vmul.f32 0.03125, %v1320_v3  ;;  %v1335_v10 = vmul.f32 %v1331_v1, %v1331_v1  ;;  %v3055_v11 = vld [vmem:[#allocation10 + $0x18] sm:$0xff]   ;;  %v3056_v3 = vld [vmem:[#allocation10 + $0x10] sm:$0xff]  }
 0xf4d   :  { %2935 = vmatprep.subr.bf16.mxu0 %v3055_v11 }
 0xf4e   :  { %v1333_v45 = vsub.f32 %v1313_v57, %v1329_v48  ;;  %v1332_v58 = vsub.f32 %v1312_v63, %v1328_v4  ;;  %v1339_v61 = vsel %vm438_vm6, %v1335_v10, 0.0  ;;  %2936 = vmatpush3.bf16.msra.mxu0 %v3055_v11  ;;  %v3769_v48 = vld [vmem:[#allocation5] sm:$0xff] }
 0xf4f   :  { %1340 = vadd.xlane.f32.xlu0 %v1339_v61  ;;  %v1326_v12 = vpop.xlane.xlu1 %1325  ;;  %2937 = vmatprep.subr.bf16.mxu0 %v3056_v3  ;;  %v1388_v4 = vrot.slane %v3769_v48, %v351_v30 }
 0xf50   :  { %v1330_v50 = vmul.f32 0.03125, %v1326_v12  ;;  %v1337_v13 = vmul.f32 %v1333_v45, %v1333_v45  ;;  %v1336_v55 = vmul.f32 %v1332_v58, %v1332_v58 }
 0xf52   :  { %v1334_v19 = vsub.f32 %v1314_v14, %v1330_v50  ;;  %v1345_v15 = vsel %vm438_vm6, %v1337_v13, 0.0  ;;  %v1342_v59 = vsel %vm438_vm6, %v1336_v55, 0.0  ;;  %2938 = vmatpush3.bf16.msra.mxu0 %v3056_v3  ;;  %v3057_v3 = vld [vmem:[#allocation8 + $0x18] sm:$0xff]  }
 0xf53   :  { %1346 = vadd.xlane.f32.xlu0 %v1345_v15  ;;  %1343 = vadd.xlane.f32.xlu1 %v1342_v59 }
 0xf54   :  { %v1338_v62 = vmul.f32 %v1334_v19, %v1334_v19  ;;  %2943 = vmatprep.subr.bf16.mxu1 %v3057_v3 }
 0xf56   :  { %v1348_v16 = vsel %vm438_vm6, %v1338_v62, 0.0 }
 0xf57   :  { %1349 = vadd.xlane.f32.xlu1 %v1348_v16 }
 0xfd8   :  { %v1341_v8 = vpop.xlane.xlu0 %1340 }
 0xfd9   :  { %v1351_v22 = vmul.f32 0.03125, %v1341_v8 }
 0xfdb   :  { %v1355_v23 = vadd.f32 1e-05, %v1351_v22  ;;  %v1536_v22 = vrot.slane %v3769_v48, %v755_v36 }
 0xfdc   :  { %v1347_v25 = vpop.xlane.xlu0 %1346  ;;  %v1344_v26 = vpop.xlane.xlu1 %1343 }
 0xfdd   :  { %3151 = vrsqrt.f32 %v1355_v23  ;;  %v1353_v29 = vmul.f32 0.03125, %v1347_v25  ;;  %v1352_v32 = vmul.f32 0.03125, %v1344_v26 }
 0xfdf   :  { %v1357_v34 = vadd.f32 1e-05, %v1353_v29  ;;  %v1356_v31 = vadd.f32 1e-05, %v1352_v32 }
 0xfe0   :  { %v1350_v39 = vpop.xlane.xlu1 %1349 }
 0xfe1   :  { %3153 = vrsqrt.f32 %v1357_v34  ;;  %v1354_v42 = vmul.f32 0.03125, %v1350_v39 }
 0xfe2   :  { %3155 = vrsqrt.f32 %v1356_v31 }
 0xfe3   :  { %v1358_v40 = vadd.f32 1e-05, %v1354_v42 }
 0xfe5   :  { %3157 = vrsqrt.f32 %v1358_v40 }
 0xfea   :  { %v3152_v41 = vpop.eup %3151 }
 0xfeb   :  { %v1363_v54 = vmul.f32 %v3152_v41, %v1331_v1 }
 0xfed   :  { %v1371_v47 = vmul.f32 %v1370_v52, %v1363_v54 }
 0xfee   :  { %v3154_v43 = vpop.eup %3153 }
 0xfef   :  { %v3156_v18 = vpop.eup %3155  ;;  %v1365_v46 = vmul.f32 %v3154_v43, %v1333_v45  ;;  %v1379_v24 = vadd.f32 %v1378_v60, %v1371_v47 }
 0xff0   :  { %v1364_v9 = vmul.f32 %v3156_v18, %v1332_v58 }
 0xff1   :  { %v1373_v63 = vmul.f32 %v1370_v52, %v1365_v46 }
 0xff2   :  { %v3158_v51 = vpop.eup %3157  ;;  %v1372_v53 = vmul.f32 %v1370_v52, %v1364_v9 }
 0xff3   :  { %v1366_v57 = vmul.f32 %v3158_v51, %v1334_v19  ;;  %v1381_v33 = vadd.f32 %v1378_v60, %v1373_v63 }
 0xff4   :  { %v1380_v27 = vadd.f32 %v1378_v60, %v1372_v53 }
 0xff5   :  { %v1374_v14 = vmul.f32 %v1370_v52, %v1366_v57 }
 0xff6   :  { %v1383_v44 = vpack.c.bf16 %v1380_v27, %v1379_v24 }
 0xff7   :  { %v1382_v35 = vadd.f32 %v1378_v60, %v1374_v14 }
 0xff8   :  { %2931 = vmatprep.mubr.msk.bf16.mxu1 %vm438_vm6, %v1383_v44 }
 0xff9   :  { %v1384_v1 = vpack.c.bf16 %v1382_v35, %v1381_v33 }
 0xffb   :  { %2932 = vmatmul.mubr.msk.bf16.vlgmr.msra.gmra.mxu1 %vm438_vm6, %v1384_v1 }
 0xffc   :  { %2944 = vmatpush3.bf16.msra.mxu1 %v3057_v3 }
0x10bb   :  { %v2933_v28 = vpop.f32.mrf.mxu1 }
0x10bc   :  { %v1450_v12 = vadd.f32 %v2933_v28, %v1388_v4  ;;  %v3058_v28 = vld [vmem:[#allocation8 + $0x10] sm:$0xff]  }
0x10bd   :  { %v1441_v10 = vpop.f32.mrf.mxu1  ;;  %2945 = vmatprep.subr.bf16.mxu1 %v3058_v28 }
0x10be   :  { %v1442_v58 = vadd.f32 %v1441_v10, %v1388_v4  ;;  %v1458_v59 = vmax.f32 %v1450_v12, 0.0  ;;  %2946 = vmatpush3.bf16.msra.mxu1 %v3058_v28 }
0x10bf   :  { %v2934_v45 = vpop.f32.mrf.mxu1 }
0x10c0   :  { %v1453_v61 = vadd.f32 %v2934_v45, %v1388_v4  ;;  %v1456_v19 = vmax.f32 %v1442_v58, 0.0 }
0x10c1   :  { %v1444_v50 = vpop.f32.mrf.mxu1 }
0x10c2   :  { %v1445_v13 = vadd.f32 %v1444_v50, %v1388_v4  ;;  %v1459_v55 = vmax.f32 %v1453_v61, 0.0 }
0x10c4   :  { %v1457_v15 = vmax.f32 %v1445_v13, 0.0  ;;  %v1461_v16 = vpack.c.bf16 %v1459_v55, %v1458_v59 }
0x10c6   :  { %v1460_v62 = vpack.c.bf16 %v1457_v15, %v1456_v19 }
0x10c8   :  { %2939 = vmatprep.mubr.msk.bf16.mxu0 %vm438_vm6, %v1460_v62 }
0x10c9   :  { %2940 = vmatmul.mubr.msk.bf16.vlgmr.msra.gmra.mxu0 %vm438_vm6, %v1461_v16  ;;  %v1611_v16 = vrot.slane %v3769_v48, %v937_v37 }
0x1189   :  { %v2941_v20 = vpop.f32.mrf.mxu0 }
0x118a   :  { %v1531_v30 = vadd.f32 %v2941_v20, %v1381_v33 }
0x118b   :  { %v1514_v21 = vpop.f32.mrf.mxu0 }
0x118c   :  { %v1529_v8 = vadd.f32 %v1514_v21, %v1379_v24  ;;  %v1539_v31 = vadd.f32 %v1536_v22, %v1531_v30 }
0x118d   :  { %v2942_v23 = vpop.f32.mrf.mxu0 }
0x118e   :  { %v1537_v25 = vadd.f32 %v1536_v22, %v1529_v8  ;;  %v1532_v29 = vadd.f32 %v2942_v23, %v1382_v35  ;;  %v1562_v42 = vsel %vm438_vm6, %v1539_v31, 0.0 }
0x118f   :  { %v1517_v26 = vpop.f32.mrf.mxu0 }
0x1190   :  { %v1530_v32 = vadd.f32 %v1517_v26, %v1380_v27  ;;  %v1556_v34 = vsel %vm438_vm6, %v1537_v25, 0.0  ;;  %v1540_v41 = vadd.f32 %v1536_v22, %v1532_v29 }
0x1191   :  { %1557 = vadd.xlane.f32.xlu0 %v1556_v34 }
0x1192   :  { %v1538_v39 = vadd.f32 %v1536_v22, %v1530_v32  ;;  %v1565_v54 = vsel %vm438_vm6, %v1540_v41, 0.0 }
0x1194   :  { %v1559_v40 = vsel %vm438_vm6, %v1538_v39, 0.0 }
0x1195   :  { %1563 = vadd.xlane.f32.xlu0 %v1562_v42  ;;  %1560 = vadd.xlane.f32.xlu1 %v1559_v40 }
0x1199   :  { %1566 = vadd.xlane.f32.xlu1 %v1565_v54 }
0x121a   :  { %v1558_v36 = vpop.xlane.xlu0 %1557 }
0x121b   :  { %v1568_v52 = vmul.f32 0.03125, %v1558_v36 }
0x121d   :  { %v1572_v43 = vsub.f32 %v1537_v25, %v1568_v52  ;;  %v1619_v25 = vrot.slane %v3769_v48, %v3710_v17 }
0x121e   :  { %v1564_v18 = vpop.xlane.xlu0 %1563  ;;  %v1561_v46 = vpop.xlane.xlu1 %1560 }
0x121f   :  { %v1570_v9 = vmul.f32 0.03125, %v1564_v18  ;;  %v1569_v47 = vmul.f32 0.03125, %v1561_v46  ;;  %v1576_v60 = vmul.f32 %v1572_v43, %v1572_v43 }
0x1221   :  { %v1574_v51 = vsub.f32 %v1539_v31, %v1570_v9  ;;  %v1573_v53 = vsub.f32 %v1538_v39, %v1569_v47  ;;  %v1580_v57 = vsel %vm438_vm6, %v1576_v60, 0.0 }
0x1222   :  { %1581 = vadd.xlane.f32.xlu0 %v1580_v57  ;;  %v1567_v63 = vpop.xlane.xlu1 %1566 }
0x1223   :  { %v1571_v24 = vmul.f32 0.03125, %v1567_v63  ;;  %v1578_v27 = vmul.f32 %v1574_v51, %v1574_v51  ;;  %v1577_v14 = vmul.f32 %v1573_v53, %v1573_v53  ;;  %v3822_v63 = vld [vmem:[#allocation7 + $0x20] sm:$0xff] }
0x1225   :  { %v1575_v44 = vsub.f32 %v1540_v41, %v1571_v24  ;;  %v1586_v33 = vsel %vm438_vm6, %v1578_v27, 0.0  ;;  %v1583_v35 = vsel %vm438_vm6, %v1577_v14, 0.0  ;;  %v3824_v14 = vld [vmem:[#allocation7 + $0x38] sm:$0xff] }
0x1226   :  { %1587 = vadd.xlane.f32.xlu0 %v1586_v33  ;;  %1584 = vadd.xlane.f32.xlu1 %v1583_v35 }
0x1227   :  { %v1579_v1 = vmul.f32 %v1575_v44, %v1575_v44 }
0x1229   :  { %v1589_v11 = vsel %vm438_vm6, %v1579_v1, 0.0  ;;  %v3827_v1 = vld [vmem:[#allocation7 + $0x28] sm:$0xff] }
0x122a   :  { %1590 = vadd.xlane.f32.xlu1 %v1589_v11 }
0x12ab   :  { %v1582_v4 = vpop.xlane.xlu0 %1581 }
0x12ac   :  { %v1592_v10 = vmul.f32 0.03125, %v1582_v4 }
0x12ae   :  { %v1596_v45 = vadd.f32 1e-05, %v1592_v10  ;;  %v3831_v10 = vld [vmem:[#allocation7 + $0x30] sm:$0xff] }
0x12af   :  { %v1588_v58 = vpop.xlane.xlu0 %1587  ;;  %v1585_v61 = vpop.xlane.xlu1 %1584 }
0x12b0   :  { %3159 = vrsqrt.f32 %v1596_v45  ;;  %v1594_v12 = vmul.f32 0.03125, %v1588_v58  ;;  %v1593_v50 = vmul.f32 0.03125, %v1585_v61 }
0x12b2   :  { %v1598_v13 = vadd.f32 1e-05, %v1594_v12  ;;  %v1597_v55 = vadd.f32 1e-05, %v1593_v50 }
0x12b3   :  { %v1591_v19 = vpop.xlane.xlu1 %1590 }
0x12b4   :  { %3161 = vrsqrt.f32 %v1598_v13  ;;  %v1595_v15 = vmul.f32 0.03125, %v1591_v19 }
0x12b5   :  { %3163 = vrsqrt.f32 %v1597_v55 }
0x12b6   :  { %v1599_v59 = vadd.f32 1e-05, %v1595_v15 }
0x12b8   :  { %3165 = vrsqrt.f32 %v1599_v59 }
0x12bd   :  { %v3160_v62 = vpop.eup %3159 }
0x12be   :  { %v1604_v20 = vmul.f32 %v3160_v62, %v1572_v43 }
0x12c0   :  { %v1612_v23 = vmul.f32 %v1611_v16, %v1604_v20 }
0x12c1   :  { %v3162_v21 = vpop.eup %3161 }
0x12c2   :  { %v3164_v30 = vpop.eup %3163  ;;  %v1606_v8 = vmul.f32 %v3162_v21, %v1574_v51  ;;  %v3792_v31 = vadd.f32 %v1619_v25, %v1612_v23 }
0x12c3   :  { %v1605_v22 = vmul.f32 %v3164_v30, %v1573_v53 }
0x12c4   :  { %v1614_v34 = vmul.f32 %v1611_v16, %v1606_v8 }
0x12c5   :  { %v3166_v26 = vpop.eup %3165  ;;  %v1613_v29 = vmul.f32 %v1611_v16, %v1605_v22 }
0x12c6   :  { %v1607_v32 = vmul.f32 %v3166_v26, %v1575_v44  ;;  %v3798_v40 = vadd.f32 %v1619_v25, %v1614_v34 }
0x12c7   :  { %v3794_v39 = vadd.f32 %v1619_v25, %v1613_v29 }
0x12c8   :  { %v1615_v42 = vmul.f32 %v1611_v16, %v1607_v32 }
0x12c9   :  { %v1624_v37 = vpack.c.bf16 %v3794_v39, %v3792_v31 }
0x12ca   :  { %v3800_v41 = vadd.f32 %v1619_v25, %v1615_v42 }
0x12cb   :  { %2947 = vmatprep.mubr.msk.bf16.mxu1 %vm438_vm6, %v1624_v37 }
0x12cc   :  { %v1625_v48 = vpack.c.bf16 %v3800_v41, %v3798_v40 }
0x12ce   :  { %2948 = vmatmul.mubr.msk.bf16.vlgmr.msra.gmra.mxu1 %vm438_vm6, %v1625_v48 }
0x138e   :  { %v2949_v54 = vpop.f32.mrf.mxu1 }
0x1390   :  { %v1678_v36 = vpop.f32.mrf.mxu1 }
0x1392   :  { %v2950_v52 = vpop.f32.mrf.mxu1 }
0x1393   :  { %v3806_v43 = vpack.c.bf16 %v2950_v52, %v2949_v54 }
0x1394   :  { %v1681_v18 = vpop.f32.mrf.mxu1 }
0x1395   :  { %v3808_v46 = vpack.c.bf16 %v1681_v18, %v1678_v36  ;;  %1699 = vrot.lane.b32.xlu0 %v3806_v43, %s3359_s3 }
0x1397   :  { %1697 = vrot.lane.b32.xlu1 %v3808_v46, %s3359_s3  ;;  %2955 = vmatprep.mubr.msk.bf16.mxu0 %vm125_vm4, %v3808_v46 }
0x1407   :  { %v1700_v9 = vpop.permute.xlu0 %1699 }
0x1408   :  { %v1711_v47 = vsel %vm125_vm4, %v1700_v9, 0  ;;  %3023 = vmatprep.subr.msk.bf16.mxu0 %vm125_vm4, %v1700_v9 }
0x1409   :  { %2952 = vmatpush3.bf16.xpose.msra.mxu0 %v1711_v47  ;;  %v1698_v60 = vpop.permute.xlu1 %1697 }
0x140a   :  { %3024 = vmatprep.subr.msk.bf16.mxu0 %vm125_vm4, %v1698_v60  ;;  %v1708_v51 = vsel %vm125_vm4, %v1698_v60, 0 }
0x1411   :  { %2954 = vmatpush3.bf16.xpose.msra.mxu0 %v1708_v51 }
0x1418   :  { %2956 = vmatmul.mubr.msk.bf16.vlgmr.msra.gmra.mxu0 %vm125_vm4, %v3806_v43 }
0x14d8   :  { %v2957_v53 = vpop.f32.mrf.mxu0 }
0x14d9   :  { %v1764_v11 = vmul.f32 0.25, %v2957_v53 }
0x14da   :  { %v1747_v57 = vpop.f32.mrf.mxu0 }
0x14db   :  { %v1762_v24 = vmul.f32 0.25, %v1747_v57  ;;  %v1768_v12 = vadd.f32 %v1764_v11, %v3831_v10 }
0x14dc   :  { %v2958_v27 = vpop.f32.mrf.mxu0 }
0x14dd   :  { %v1765_v44 = vmul.f32 0.25, %v2958_v27  ;;  %v1766_v33 = vadd.f32 %v1762_v24, %v3822_v63  ;;  %v1776_v50 = vsel %vm438_vm6, %v1768_v12, -inf }
0x14de   :  { %v1750_v35 = vpop.f32.mrf.mxu0 }
0x14df   :  { %v1763_v3 = vmul.f32 0.25, %v1750_v35  ;;  %v1770_v28 = vsel %vm438_vm6, %v1766_v33, -inf  ;;  %v1769_v4 = vadd.f32 %v1765_v44, %v3824_v14 }
0x14e0   :  { %1771 = vmax.xlane.f32.xlu1 %v1770_v28 }
0x14e1   :  { %v1767_v45 = vadd.f32 %v1763_v3, %v3827_v1  ;;  %v1779_v58 = vsel %vm438_vm6, %v1769_v4, -inf }
0x14e3   :  { %v1773_v61 = vsel %vm438_vm6, %v1767_v45, -inf }
0x14e4   :  { %1780 = vmax.xlane.f32.xlu1 %v1779_v58  ;;  %1774 = vmax.xlane.f32.xlu0 %v1773_v61 }
0x14e8   :  { %1777 = vmax.xlane.f32.xlu0 %v1776_v50 }
0x14f5   :  { %1816 = vrot.lane.b32.xlu1 %v3808_v46, %s3351_s27 }
0x1569   :  { %v1772_v13 = vpop.xlane.xlu1 %1771 }
0x156a   :  { %v1782_v62 = vsub.f32 %v1766_v33, %v1772_v13 }
0x156c   :  { %v1786_v8 = vmul.f32 1.442695, %v1782_v62 }
0x156d   :  { %v1781_v55 = vpop.xlane.xlu1 %1780  ;;  %v1775_v19 = vpop.xlane.xlu0 %1774 }
0x156e   :  { %v1785_v15 = vsub.f32 %v1769_v4, %v1781_v55  ;;  %v1783_v59 = vsub.f32 %v1767_v45, %v1775_v19 }
0x1570   :  { %v1792_v16 = vmul.f32 1.442695, %v1785_v15  ;;  %v1788_v20 = vmul.f32 1.442695, %v1783_v59 }
0x1571   :  { %v1778_v21 = vpop.xlane.xlu0 %1777  ;;  %v1817_v48 = vpop.permute.xlu1 %1816 }
0x1572   :  { %3167 = vpow2.f32 %v1792_v16  ;;  %v1784_v30 = vsub.f32 %v1768_v12, %v1778_v21 }
0x1573   :  { %3169 = vpow2.f32 %v1788_v20 }
0x1574   :  { %v1790_v22 = vmul.f32 1.442695, %v1784_v30 }
0x1576   :  { %3171 = vpow2.f32 %v1790_v22 }
0x1577   :  { %3173 = vpow2.f32 %v1786_v8 }
0x157f   :  { %v3168_v23 = vpop.eup %3167 }
0x1580   :  { %v1803_v25 = vsel %vm438_vm6, %v3168_v23, 0.0  ;;  %v3170_v26 = vpop.eup %3169 }
0x1581   :  { %1804 = vadd.xlane.f32.xlu1 %v1803_v25  ;;  %v1797_v32 = vsel %vm438_vm6, %v3170_v26, 0.0 }
0x1583   :  { %v3172_v29 = vpop.eup %3171 }
0x1584   :  { %v1800_v34 = vsel %vm438_vm6, %v3172_v29, 0.0  ;;  %v3174_v42 = vpop.eup %3173 }
0x1585   :  { %1798 = vadd.xlane.f32.xlu1 %v1797_v32  ;;  %1801 = vadd.xlane.f32.xlu0 %v1800_v34  ;;  %v1794_v37 = vsel %vm438_vm6, %v3174_v42, 0.0 }
0x1589   :  { %1795 = vadd.xlane.f32.xlu0 %v1794_v37 }
0x1596   :  { %1895 = vrot.lane.b32.xlu1 %v3806_v43, %s3362_s30 }
0x159a   :  { %1893 = vrot.lane.b32.xlu1 %v3808_v46, %s3362_s30 }
0x159e   :  { %1891 = vrot.lane.b32.xlu1 %v3806_v43, %s3363_s12 }
0x159f   :  { %1818 = vrot.lane.b32.xlu0 %v3806_v43, %s3351_s27 }
0x15a3   :  { %1889 = vrot.lane.b32.xlu0 %v3808_v46, %s3363_s12 }
0x160a   :  { %v1805_v54 = vpop.xlane.xlu1 %1804 }
0x160e   :  { %v1799_v36 = vpop.xlane.xlu1 %1798  ;;  %v1802_v52 = vpop.xlane.xlu0 %1801 }
0x160f   :  { %3175 = vrcp.f32 %v1802_v52 }
0x1610   :  { %3177 = vrcp.f32 %v1799_v36 }
0x1611   :  { %3179 = vrcp.f32 %v1805_v54 }
0x1612   :  { %v1796_v18 = vpop.xlane.xlu0 %1795  ;;  %v1896_v43 = vpop.permute.xlu1 %1895 }
0x1613   :  { %3181 = vrcp.f32 %v1796_v18  ;;  %v1907_v35 = vsel %vm125_vm4, %v1896_v43, 0 }
0x1616   :  { %v1819_v9 = vpop.permute.xlu0 %1818  ;;  %v1894_v3 = vpop.permute.xlu1 %1893 }
0x1617   :  { %2959 = vmatprep.subr.bf16.mxu1 %v1819_v9  ;;  %2975 = vmatprep.subr.bf16.mxu0 %v1819_v9  ;;  %v1904_v28 = vsel %vm125_vm4, %v1894_v3, 0 }
0x1618   :  { %2960 = vmatpush3.bf16.msra.mxu1 %v1819_v9  ;;  %2976 = vmatpush3.bf16.msra.mxu0 %v1819_v9 }
0x1619   :  { %2961 = vmatprep.subr.bf16.mxu1 %v1817_v48  ;;  %2977 = vmatprep.subr.bf16.mxu0 %v1817_v48 }
0x161a   :  { %v1890_v11 = vpop.permute.xlu0 %1889  ;;  %v1892_v4 = vpop.permute.xlu1 %1891 }
0x161c   :  { %2962 = vmatpush3.bf16.msra.mxu1 %v1817_v48  ;;  %2978 = vmatpush3.bf16.msra.mxu0 %v1817_v48  ;;  %v3176_v46 = vpop.eup %3175 }
0x161d   :  { %3025 = vmatprep.subr.msk.bf16.mxu1 %vm125_vm4, %v1896_v43  ;;  %v3178_v47 = vpop.eup %3177  ;;  %v1812_v53 = vmul.f32 %v3176_v46, %v3172_v29 }
0x161e   :  { %v3180_v60 = vpop.eup %3179  ;;  %v1811_v24 = vmul.f32 %v3178_v47, %v3170_v26 }
0x161f   :  { %v1813_v27 = vmul.f32 %v3180_v60, %v3168_v23 }
0x1620   :  { %v3182_v51 = vpop.eup %3181 }
0x1621   :  { %v1810_v57 = vmul.f32 %v3182_v51, %v3174_v42  ;;  %v1815_v33 = vpack.c.bf16 %v1813_v27, %v1812_v53 }
0x1623   :  { %v1814_v44 = vpack.c.bf16 %v1811_v24, %v1810_v57 }
0x1625   :  { %2963 = vmatprep.mubr.msk.bf16.mxu1 %vm438_vm6, %v1814_v44 }
0x1626   :  { %2964 = vmatmul.mubr.msk.bf16.vlgmr.msra.gmra.mxu1 %vm438_vm6, %v1815_v33 }
0x1627   :  { %2968 = vmatpush3.bf16.xpose.msra.mxu1 %v1907_v35  ;;  %2971 = vmatprep.mubr.msk.bf16.mxu1 %vm125_vm4, %v1890_v11 }
0x1628   :  { %3026 = vmatprep.subr.msk.bf16.mxu1 %vm125_vm4, %v1894_v3 }
0x162f   :  { %2970 = vmatpush3.bf16.xpose.msra.mxu1 %v1904_v28 }
0x1636   :  { %2972 = vmatmul.mubr.msk.bf16.vlgmr.msra.gmra.mxu1 %vm125_vm4, %v1892_v4 }
0x16e6   :  { %v3862_v45 = vpop.f32.mrf.mxu1 }
0x16e8   :  { %v3864_v58 = vpop.f32.mrf.mxu1 }
0x16ea   :  { %v3866_v61 = vpop.f32.mrf.mxu1 }
0x16ec   :  { %v3868_v12 = vpop.f32.mrf.mxu1 }
0x16f6   :  { %v2973_v50 = vpop.f32.mrf.mxu1 }
0x16f7   :  { %v1960_v55 = vmul.f32 0.25, %v2973_v50 }
0x16f8   :  { %v1943_v13 = vpop.f32.mrf.mxu1 }
0x16f9   :  { %v1958_v19 = vmul.f32 0.25, %v1943_v13  ;;  %v1964_v30 = vadd.f32 %v1960_v55, %v3831_v10 }
0x16fa   :  { %v2974_v15 = vpop.f32.mrf.mxu1 }
0x16fb   :  { %v1962_v59 = vadd.f32 %v1958_v19, %v3822_v63  ;;  %v1961_v16 = vmul.f32 0.25, %v2974_v15  ;;  %v1972_v22 = vsel %vm438_vm6, %v1964_v30, -inf  ;;  %v2070_v19 = vrot.slane %v3740_v38, %v3472_v7 }
0x16fc   :  { %v1946_v62 = vpop.f32.mrf.mxu1  ;;  %v1880_v15 = vrot.slane %v3740_v38, %v3509_v56 }
0x16fd   :  { %v1959_v20 = vmul.f32 0.25, %v1946_v62  ;;  %v1966_v21 = vsel %vm438_vm6, %v1962_v59, -inf  ;;  %v1965_v25 = vadd.f32 %v1961_v16, %v3824_v14 }
0x16fe   :  { %1967 = vmax.xlane.f32.xlu0 %v1966_v21  ;;  %v1881_v21 = vmul.f32 %v1880_v15, %v3864_v58 }
0x16ff   :  { %v1963_v8 = vadd.f32 %v1959_v20, %v3827_v1  ;;  %v1975_v63 = vsel %vm438_vm6, %v1965_v25, -inf  ;;  %v1883_v20 = vmul.f32 %v3862_v45, %v1880_v15 }
0x1701   :  { %v1969_v23 = vsel %vm438_vm6, %v1963_v8, -inf }
0x1702   :  { %1973 = vmax.xlane.f32.xlu0 %v1972_v22  ;;  %1970 = vmax.xlane.f32.xlu1 %v1969_v23 }
0x1706   :  { %1976 = vmax.xlane.f32.xlu0 %v1975_v63 }
0x1787   :  { %v1968_v26 = vpop.xlane.xlu0 %1967 }
0x1788   :  { %v1978_v29 = vsub.f32 %v1962_v59, %v1968_v26  ;;  %v1884_v26 = vmul.f32 %v3866_v61, %v1880_v15 }
0x178a   :  { %v1982_v32 = vmul.f32 1.442695, %v1978_v29  ;;  %v1882_v29 = vmul.f32 %v1880_v15, %v3868_v12 }
0x178b   :  { %v1974_v34 = vpop.xlane.xlu0 %1973  ;;  %v1971_v42 = vpop.xlane.xlu1 %1970 }
0x178c   :  { %3183 = vpow2.f32 %v1982_v32  ;;  %v1980_v10 = vsub.f32 %v1964_v30, %v1974_v34  ;;  %v1979_v37 = vsub.f32 %v1963_v8, %v1971_v42 }
0x178e   :  { %v1986_v1 = vmul.f32 1.442695, %v1980_v10  ;;  %v1984_v48 = vmul.f32 1.442695, %v1979_v37 }
0x178f   :  { %v1977_v54 = vpop.xlane.xlu0 %1976 }
0x1790   :  { %3185 = vpow2.f32 %v1986_v1  ;;  %v1981_v36 = vsub.f32 %v1965_v25, %v1977_v54 }
0x1791   :  { %3187 = vpow2.f32 %v1984_v48 }
0x1792   :  { %v1988_v14 = vmul.f32 1.442695, %v1981_v36 }
0x1794   :  { %3189 = vpow2.f32 %v1988_v14 }
0x1799   :  { %v3184_v52 = vpop.eup %3183 }
0x179a   :  { %v1990_v18 = vsel %vm438_vm6, %v3184_v52, 0.0 }
0x179b   :  { %1991 = vadd.xlane.f32.xlu0 %v1990_v18 }
0x179d   :  { %v3186_v9 = vpop.eup %3185 }
0x179e   :  { %v3188_v43 = vpop.eup %3187  ;;  %v1996_v46 = vsel %vm438_vm6, %v3186_v9, 0.0 }
0x179f   :  { %1997 = vadd.xlane.f32.xlu0 %v1996_v46  ;;  %v1993_v47 = vsel %vm438_vm6, %v3188_v43, 0.0 }
0x17a0   :  { %1994 = vadd.xlane.f32.xlu1 %v1993_v47 }
0x17a1   :  { %v3190_v60 = vpop.eup %3189 }
0x17a2   :  { %v1999_v51 = vsel %vm438_vm6, %v3190_v60, 0.0 }
0x17a4   :  { %2000 = vadd.xlane.f32.xlu1 %v1999_v51 }
0x1824   :  { %v1992_v53 = vpop.xlane.xlu0 %1991 }
0x1825   :  { %3191 = vrcp.f32 %v1992_v53 }
0x1828   :  { %v1998_v57 = vpop.xlane.xlu0 %1997 }
0x1829   :  { %v1995_v24 = vpop.xlane.xlu1 %1994 }
0x182a   :  { %3193 = vrcp.f32 %v1995_v24 }
0x182b   :  { %3195 = vrcp.f32 %v1998_v57 }
0x182d   :  { %v2001_v27 = vpop.xlane.xlu1 %2000 }
0x182e   :  { %3197 = vrcp.f32 %v2001_v27 }
0x1832   :  { %v3192_v44 = vpop.eup %3191 }
0x1833   :  { %v2006_v35 = vmul.f32 %v3192_v44, %v3184_v52  ;;  %v3059_v44 = vld [vmem:[#allocation10 + $0x28] sm:$0xff]  }
0x1834   :  { %2983 = vmatprep.subr.bf16.mxu0 %v3059_v44 }
0x1837   :  { %v3194_v33 = vpop.eup %3193 }
0x1838   :  { %v2007_v11 = vmul.f32 %v3194_v33, %v3188_v43  ;;  %v3196_v3 = vpop.eup %3195  ;;  %v3060_v33 = vld [vmem:[#allocation10 + $0x20] sm:$0xff]  }
0x1839   :  { %v2008_v50 = vmul.f32 %v3196_v3, %v3186_v9 }
0x183a   :  { %v2010_v28 = vpack.c.bf16 %v2007_v11, %v2006_v35 }
0x183b   :  { %v3198_v4 = vpop.eup %3197 }
0x183c   :  { %2979 = vmatprep.mubr.msk.bf16.mxu0 %vm438_vm6, %v2010_v28  ;;  %v2009_v13 = vmul.f32 %v3198_v4, %v3190_v60 }
0x183e   :  { %v2011_v55 = vpack.c.bf16 %v2009_v13, %v2008_v50 }
0x1840   :  { %2980 = vmatmul.mubr.msk.bf16.vlgmr.msra.gmra.mxu0 %vm438_vm6, %v2011_v55 }
0x1841   :  { %2984 = vmatpush3.bf16.msra.mxu0 %v3059_v44 }
0x1842   :  { %2985 = vmatprep.subr.bf16.mxu0 %v3060_v33 }
0x1845   :  { %2986 = vmatpush3.bf16.msra.mxu0 %v3060_v33 }
0x1900   :  { %v2981_v59 = vpop.f32.mrf.mxu0 }
0x1901   :  { %v2073_v62 = vmul.f32 %v2981_v59, %v2070_v19 }
0x1902   :  { %v2052_v16 = vpop.f32.mrf.mxu0 }
0x1903   :  { %v2071_v30 = vmul.f32 %v2070_v19, %v2052_v16  ;;  %v2077_v22 = vadd.f32 %v2073_v62, %v1883_v20 }
0x1904   :  { %v2982_v8 = vpop.f32.mrf.mxu0 }
0x1905   :  { %v2075_v23 = vadd.f32 %v2071_v30, %v1881_v21  ;;  %v2074_v25 = vmul.f32 %v2982_v8, %v2070_v19  ;;  %v2081_v45 = vadd.f32 %v2077_v22, %v3798_v40  ;;  %v3218_v21 = vld [vmem:[#allocation5 + $0x8] sm:$0xff] }
0x1906   :  { %v2055_v63 = vpop.f32.mrf.mxu0  ;;  %v2138_v30 = vrot.slane %v3218_v21, %v3504_v49 }
0x1907   :  { %v2072_v32 = vmul.f32 %v2070_v19, %v2055_v63  ;;  %v2079_v38 = vadd.f32 %v2075_v23, %v3792_v31  ;;  %v2078_v34 = vadd.f32 %v2074_v25, %v1884_v26  ;;  %v2089_v37 = vsel %vm438_vm6, %v2081_v45, 0.0 }
0x1908   :  { %v2146_v26 = vrot.slane %v3218_v21, %v3509_v56 }
0x1909   :  { %v2076_v42 = vadd.f32 %v2072_v32, %v1882_v29  ;;  %v2083_v10 = vsel %vm438_vm6, %v2079_v38, 0.0  ;;  %v2082_v61 = vadd.f32 %v2078_v34, %v3800_v41 }
0x190a   :  { %2084 = vadd.xlane.f32.xlu0 %v2083_v10 }
0x190b   :  { %v2080_v58 = vadd.f32 %v2076_v42, %v3794_v39  ;;  %v2092_v12 = vsel %vm438_vm6, %v2082_v61, 0.0 }
0x190d   :  { %v2086_v1 = vsel %vm438_vm6, %v2080_v58, 0.0 }
0x190e   :  { %2090 = vadd.xlane.f32.xlu0 %v2089_v37  ;;  %2087 = vadd.xlane.f32.xlu1 %v2086_v1 }
0x1912   :  { %2093 = vadd.xlane.f32.xlu1 %v2092_v12  ;;  %v3061_v12 = vld [vmem:[#allocation10 + $0x38] sm:$0xff]  }
0x1913   :  { %2991 = vmatprep.subr.bf16.mxu1 %v3061_v12 }
0x1914   :  { %2992 = vmatpush3.bf16.msra.mxu1 %v3061_v12 }
0x1993   :  { %v2085_v31 = vpop.xlane.xlu0 %2084 }
0x1994   :  { %v2095_v48 = vmul.f32 0.03125, %v2085_v31  ;;  %v3062_v31 = vld [vmem:[#allocation10 + $0x30] sm:$0xff]  }
0x1995   :  { %2993 = vmatprep.subr.bf16.mxu1 %v3062_v31 }
0x1996   :  { %v2099_v54 = vsub.f32 %v2079_v38, %v2095_v48  ;;  %2994 = vmatpush3.bf16.msra.mxu1 %v3062_v31 }
0x1997   :  { %v2091_v36 = vpop.xlane.xlu0 %2090  ;;  %v2088_v14 = vpop.xlane.xlu1 %2087  ;;  %3007 = vmatprep.subr.bf16.mxu1 %v3356_v0 }
0x1998   :  { %v2097_v40 = vmul.f32 0.03125, %v2091_v36  ;;  %v2096_v52 = vmul.f32 0.03125, %v2088_v14  ;;  %v2103_v18 = vmul.f32 %v2099_v54, %v2099_v54 }
0x199a   :  { %v2101_v39 = vsub.f32 %v2081_v45, %v2097_v40  ;;  %v2100_v9 = vsub.f32 %v2080_v58, %v2096_v52  ;;  %v2107_v43 = vsel %vm438_vm6, %v2103_v18, 0.0 }
0x199b   :  { %2108 = vadd.xlane.f32.xlu0 %v2107_v43  ;;  %v2094_v46 = vpop.xlane.xlu1 %2093 }
0x199c   :  { %v2098_v41 = vmul.f32 0.03125, %v2094_v46  ;;  %v2105_v47 = vmul.f32 %v2101_v39, %v2101_v39  ;;  %v2104_v60 = vmul.f32 %v2100_v9, %v2100_v9 }
0x199e   :  { %v2102_v51 = vsub.f32 %v2082_v61, %v2098_v41  ;;  %v2113_v53 = vsel %vm438_vm6, %v2105_v47, 0.0  ;;  %v2110_v57 = vsel %vm438_vm6, %v2104_v60, 0.0 }
0x199f   :  { %2114 = vadd.xlane.f32.xlu0 %v2113_v53  ;;  %2111 = vadd.xlane.f32.xlu1 %v2110_v57  ;;  %v3063_v53 = vld [vmem:[#allocation10 + $0x48] sm:$0xff]   ;;  %v3064_v57 = vld [vmem:[#allocation10 + $0x40] sm:$0xff]  }
0x19a0   :  { %v2106_v24 = vmul.f32 %v2102_v51, %v2102_v51  ;;  %2999 = vmatprep.subr.bf16.mxu0 %v3063_v53 }
0x19a2   :  { %v2116_v27 = vsel %vm438_vm6, %v2106_v24, 0.0 }
0x19a3   :  { %2117 = vadd.xlane.f32.xlu1 %v2116_v27 }
0x1a24   :  { %v2109_v35 = vpop.xlane.xlu0 %2108 }
0x1a25   :  { %v2119_v11 = vmul.f32 0.03125, %v2109_v35 }
0x1a27   :  { %v2123_v3 = vadd.f32 1e-05, %v2119_v11 }
0x1a28   :  { %v2115_v28 = vpop.xlane.xlu0 %2114  ;;  %v2112_v4 = vpop.xlane.xlu1 %2111 }
0x1a29   :  { %3199 = vrsqrt.f32 %v2123_v3  ;;  %v2121_v50 = vmul.f32 0.03125, %v2115_v28  ;;  %v2120_v13 = vmul.f32 0.03125, %v2112_v4  ;;  %v2304_v3 = vrot.slane %v3218_v21, %v3763_v2 }
0x1a2b   :  { %v2125_v55 = vadd.f32 1e-05, %v2121_v50  ;;  %v2124_v19 = vadd.f32 1e-05, %v2120_v13 }
0x1a2c   :  { %v2118_v15 = vpop.xlane.xlu1 %2117 }
0x1a2d   :  { %3201 = vrsqrt.f32 %v2125_v55  ;;  %v2122_v59 = vmul.f32 0.03125, %v2118_v15 }
0x1a2e   :  { %3203 = vrsqrt.f32 %v2124_v19 }
0x1a2f   :  { %v2126_v62 = vadd.f32 1e-05, %v2122_v59 }
0x1a31   :  { %3205 = vrsqrt.f32 %v2126_v62 }
0x1a36   :  { %v3200_v16 = vpop.eup %3199 }
0x1a37   :  { %v2131_v20 = vmul.f32 %v3200_v16, %v2099_v54  ;;  %v2156_v54 = vrot.slane %v3218_v21, %v3472_v7 }
0x1a39   :  { %v2139_v63 = vmul.f32 %v2138_v30, %v2131_v20 }
0x1a3a   :  { %v3202_v8 = vpop.eup %3201 }
0x1a3b   :  { %v3204_v22 = vpop.eup %3203  ;;  %v2133_v23 = vmul.f32 %v3202_v8, %v2101_v39  ;;  %v2147_v42 = vadd.f32 %v2146_v26, %v2139_v63 }
0x1a3c   :  { %v2132_v25 = vmul.f32 %v3204_v22, %v2100_v9 }
0x1a3d   :  { %v2141_v34 = vmul.f32 %v2138_v30, %v2133_v23 }
0x1a3e   :  { %v3206_v29 = vpop.eup %3205  ;;  %v2140_v32 = vmul.f32 %v2138_v30, %v2132_v25 }
0x1a3f   :  { %v2134_v38 = vmul.f32 %v3206_v29, %v2102_v51  ;;  %v2149_v37 = vadd.f32 %v2146_v26, %v2141_v34 }
0x1a40   :  { %v2148_v10 = vadd.f32 %v2146_v26, %v2140_v32 }
0x1a41   :  { %v2142_v45 = vmul.f32 %v2138_v30, %v2134_v38 }
0x1a42   :  { %v2151_v58 = vpack.c.bf16 %v2148_v10, %v2147_v42 }
0x1a43   :  { %v2150_v1 = vadd.f32 %v2146_v26, %v2142_v45 }
0x1a44   :  { %2987 = vmatprep.mubr.msk.bf16.mxu0 %vm438_vm6, %v2151_v58 }
0x1a45   :  { %v2152_v61 = vpack.c.bf16 %v2150_v1, %v2149_v37 }
0x1a47   :  { %2988 = vmatmul.mubr.msk.bf16.vlgmr.msra.gmra.mxu0 %vm438_vm6, %v2152_v61 }
0x1a48   :  { %3000 = vmatpush3.bf16.msra.mxu0 %v3063_v53 }
0x1a49   :  { %3001 = vmatprep.subr.bf16.mxu0 %v3064_v57 }
0x1a4c   :  { %3002 = vmatpush3.bf16.msra.mxu0 %v3064_v57 }
0x1b07   :  { %v2989_v48 = vpop.f32.mrf.mxu0 }
0x1b08   :  { %v2218_v18 = vadd.f32 %v2989_v48, %v2156_v54 }
0x1b09   :  { %v2209_v36 = vpop.f32.mrf.mxu0 }
0x1b0a   :  { %v2210_v40 = vadd.f32 %v2209_v36, %v2156_v54  ;;  %v2226_v47 = vmax.f32 %v2218_v18, 0.0 }
0x1b0b   :  { %v2990_v14 = vpop.f32.mrf.mxu0 }
0x1b0c   :  { %v2221_v52 = vadd.f32 %v2990_v14, %v2156_v54  ;;  %v2224_v46 = vmax.f32 %v2210_v40, 0.0 }
0x1b0d   :  { %v2212_v39 = vpop.f32.mrf.mxu0 }
0x1b0e   :  { %v2213_v9 = vadd.f32 %v2212_v39, %v2156_v54  ;;  %v2227_v43 = vmax.f32 %v2221_v52, 0.0 }
0x1b10   :  { %v2225_v41 = vmax.f32 %v2213_v9, 0.0  ;;  %v2229_v51 = vpack.c.bf16 %v2227_v43, %v2226_v47 }
0x1b12   :  { %v2228_v60 = vpack.c.bf16 %v2225_v41, %v2224_v46 }
0x1b14   :  { %2995 = vmatprep.mubr.msk.bf16.mxu1 %vm438_vm6, %v2228_v60 }
0x1b15   :  { %2996 = vmatmul.mubr.msk.bf16.vlgmr.msra.gmra.mxu1 %vm438_vm6, %v2229_v51 }
0x1b16   :  { %3011 = vmatprep.mubr.msk.bf16.mxu1 %vm3357_vm0, %v3356_v0 }
0x1bd5   :  { %v2997_v24 = vpop.f32.mrf.mxu1 }
0x1bd6   :  { %v2299_v11 = vadd.f32 %v2997_v24, %v2149_v37 }
0x1bd7   :  { %v2282_v27 = vpop.f32.mrf.mxu1 }
0x1bd8   :  { %v2297_v33 = vadd.f32 %v2282_v27, %v2147_v42  ;;  %v3921_v19 = vadd.f32 %v2304_v3, %v2299_v11 }
0x1bd9   :  { %v2998_v44 = vpop.f32.mrf.mxu1 }
0x1bda   :  { %v2300_v35 = vadd.f32 %v2998_v44, %v2150_v1  ;;  %v3917_v13 = vadd.f32 %v2304_v3, %v2297_v33 }
0x1bdb   :  { %v2285_v28 = vpop.f32.mrf.mxu1 }
0x1bdc   :  { %v2298_v4 = vadd.f32 %v2285_v28, %v2148_v10  ;;  %v3915_v50 = vadd.f32 %v2304_v3, %v2300_v35  ;;  %v2420_v10 = vand.u32 127, %v211_v5 }
0x1bde   :  { %v3919_v55 = vadd.f32 %v2304_v3, %v2298_v4  ;;  %v2310_v59 = vpack.c.bf16 %v3915_v50, %v3921_v19  ;;  %v2423_v58 = vsub.s32 %v2420_v10, %v3469_v6  ;;  %v3366_v6 = vmov 0  }
0x1bdf   :  { %3049 = vset.pattern.permute.xlu0 %v3366_v6  ;;  %3048 = vset.pattern.permute.xlu1 %v3366_v6 }
0x1be0   :  { %v2309_v15 = vpack.c.bf16 %v3919_v55, %v3917_v13 }
0x1be2   :  { %3003 = vmatprep.mubr.msk.bf16.mxu0 %vm438_vm6, %v2309_v15 }
0x1be3   :  { %3004 = vmatmul.mubr.msk.bf16.vlgmr.msra.gmra.mxu0 %vm438_vm6, %v2310_v59 }
0x1ca3   :  { %v3005_v62 = vpop.f32.mrf.mxu0 }
0x1ca4   :  { %v2394_v20 = vrot.slane %v3005_v62, %v3710_v17 }
0x1ca5   :  { %v2368_v16 = vpop.f32.mrf.mxu0 }
0x1ca6   :  { %v2386_v21 = vrot.slane %v2368_v16, %v3710_v17  ;;  %v2401_v23 = vmul.f32 %v3005_v62, %v2394_v20 }
0x1ca7   :  { %v3006_v30 = vpop.f32.mrf.mxu0 }
0x1ca8   :  { %v2399_v8 = vmul.f32 %v2386_v21, %v2368_v16  ;;  %v2398_v25 = vrot.slane %v3006_v30, %v3710_v17  ;;  %v2409_v38 = vsel %vm438_vm6, %v2401_v23, 0.0 }
0x1ca9   :  { %v2371_v22 = vpop.f32.mrf.mxu0 }
0x1caa   :  { %v2390_v63 = vrot.slane %v2371_v22, %v3710_v17  ;;  %v2403_v26 = vsel %vm438_vm6, %v2399_v8, 0.0  ;;  %v2402_v32 = vmul.f32 %v3006_v30, %v2398_v25 }
0x1cab   :  { %2404 = vadd.xlane.f32.xlu0 %v2403_v26 }
0x1cac   :  { %v2400_v29 = vmul.f32 %v2390_v63, %v2371_v22  ;;  %v2412_v42 = vsel %vm438_vm6, %v2402_v32, 0.0 }
0x1cae   :  { %v2406_v34 = vsel %vm438_vm6, %v2400_v29, 0.0 }
0x1caf   :  { %2410 = vadd.xlane.f32.xlu0 %v2409_v38  ;;  %2407 = vadd.xlane.f32.xlu1 %v2406_v34 }
0x1cb3   :  { %2413 = vadd.xlane.f32.xlu1 %v2412_v42  ;;  %v3065_v42 = vld [vmem:[%s3989_s9 + $0x8] sm:$0xff]  }
0x1cb4   :  { %3008 = vmatpush3.bf16.msra.mxu1 %v3065_v42 }
0x1cb5   :  { %3009 = vmatprep.subr.bf16.mxu1 %v3356_v0 }
0x1d34   :  { %v2405_v45 = vpop.xlane.xlu0 %2404 }
0x1d35   :  { %v2424_v1 = vrot.slane %v2405_v45, %v2423_v58 }
0x1d38   :  { %v2411_v17 = vpop.xlane.xlu0 %2410  ;;  %v2408_v37 = vpop.xlane.xlu1 %2407 }
0x1d39   :  { %v2428_v61 = vrot.slane %v2408_v37, %v2423_v58  ;;  %v2432_v12 = vrot.slane %v2411_v17, %v2423_v58 }
0x1d3b   :  { %v2438_v31 = vsel %vm2437_vm7, %v2428_v61, %v2424_v1 }
0x1d3c   :  { %v2414_v48 = vpop.xlane.xlu1 %2413  ;;  %v2440_v36 = vsel %vm2439_vm8, %v2432_v12, %v2438_v31 }
0x1d3d   :  { %v2436_v54 = vrot.slane %v2414_v48, %v2423_v58 }
0x1d3f   :  { %v2442_v5 = vsel %vm2441_vm9, %v2436_v54, %v2440_v36 }
0x1d40   :  { %v2445_v14 = vsel %vm2444_vm10, %v2442_v5, -inf }
0x1d41   :  { %2446 = vmax.xlane.f32.xlu0 %v2445_v14 }
0x1dca   :  { %v2447_v40 = vpop.xlane.xlu0 %2446 }
0x1dcb   :  { %v2452_v52 = vrot.slane %v2447_v40, %v3504_v49  ;;  %v2456_v18 = vrot.slane %v2447_v40, %v3509_v56  ;;  %v2460_v39 = vrot.slane %v2447_v40, %v3472_v7  ;;  %v2464_v9 = vrot.slane %v2447_v40, %v3763_v2 }
0x1dcd   :  { %v2469_v43 = vsub.f32 %v2405_v45, %v2452_v52  ;;  %v2470_v46 = vsub.f32 %v2408_v37, %v2456_v18  ;;  %v2471_v41 = vsub.f32 %v2411_v17, %v2460_v39  ;;  %v2472_v51 = vsub.f32 %v2414_v48, %v2464_v9 }
0x1dcf   :  { %v2473_v47 = vmul.f32 1.442695, %v2469_v43  ;;  %v2475_v60 = vmul.f32 1.442695, %v2470_v46  ;;  %v2477_v53 = vmul.f32 1.442695, %v2471_v41 }
0x1dd0   :  { %v2479_v57 = vmul.f32 1.442695, %v2472_v51 }
0x1dd1   :  { %3207 = vpow2.f32 %v2473_v47 }
0x1dd2   :  { %3209 = vpow2.f32 %v2475_v60 }
0x1dd3   :  { %3211 = vpow2.f32 %v2477_v53 }
0x1dd4   :  { %3213 = vpow2.f32 %v2479_v57 }
0x1dde   :  { %v3208_v24 = vpop.eup %3207 }
0x1ddf   :  { %v3210_v27 = vpop.eup %3209  ;;  %2486 = vperm.xlu1 %3048, %v3208_v24  }
0x1de0   :  { %2489 = vperm.xlu0 %3049, %v3210_v27   ;;  %v3212_v44 = vpop.eup %3211 }
0x1de1   :  { %v3214_v33 = vpop.eup %3213 }
0x1de3   :  { %2492 = vperm.xlu1 %3048, %v3212_v44  }
0x1de7   :  { %2495 = vperm.xlu1 %3048, %v3214_v33  }
0x1e5a   :  { %v2487_v35 = vpop.permute.xlu1 %2486 }
0x1e5b   :  { %v2490_v11 = vpop.permute.xlu0 %2489  ;;  %v2500_v4 = vrot.slane %v2487_v35, %v2423_v58 }
0x1e5c   :  { %v2504_v28 = vrot.slane %v2490_v11, %v2423_v58 }
0x1e5e   :  { %v2493_v3 = vpop.permute.xlu1 %2492  ;;  %v2513_v62 = vsel %vm2437_vm7, %v2504_v28, %v2500_v4 }
0x1e5f   :  { %v2508_v15 = vrot.slane %v2493_v3, %v2423_v58 }
0x1e61   :  { %v2514_v20 = vsel %vm2439_vm8, %v2508_v15, %v2513_v62 }
0x1e62   :  { %v2496_v59 = vpop.permute.xlu1 %2495 }
0x1e63   :  { %v2512_v16 = vrot.slane %v2496_v59, %v2423_v58 }
0x1e65   :  { %v2515_v21 = vsel %vm2441_vm9, %v2512_v16, %v2514_v20  ;;  %v2755_v16 = vld [vmem:[%s3990_s10] ss:$0 sm:$0xff] }
0x1e66   :  { %v2517_v30 = vsel %vm2444_vm10, %v2515_v21, 0.0 }
0x1e67   :  { %2518 = vadd.xlane.f32.xlu1 %v2517_v30 }
0x1ef0   :  { %v2519_v8 = vpop.xlane.xlu1 %2518 }
0x1ef1   :  { %3215 = vrcp.f32 %v2519_v8 }
0x1efe   :  { %v3216_v22 = vpop.eup %3215 }
0x1eff   :  { %v2525_v23 = vrot.slane %v3216_v22, %v3504_v49  ;;  %v2529_v63 = vrot.slane %v3216_v22, %v3509_v56  ;;  %v2533_v29 = vrot.slane %v3216_v22, %v3472_v7  ;;  %v2537_v38 = vrot.slane %v3216_v22, %v3763_v2  ;;  %v3066_v49 = vld [vmem:[%s3989_s9] sm:$0xff]  }
0x1f00   :  { %3010 = vmatpush3.bf16.msra.mxu1 %v3066_v49 }
0x1f01   :  { %v2542_v25 = vmul.f32 %v3208_v24, %v2525_v23  ;;  %v2543_v26 = vmul.f32 %v3210_v27, %v2529_v63  ;;  %v2544_v32 = vmul.f32 %v3212_v44, %v2533_v29  ;;  %v2545_v34 = vmul.f32 %v3214_v33, %v2537_v38 }
0x1f03   :  { %2548 = vperm.xlu0 %3049, %v2542_v25  }
0x1f07   :  { %2553 = vperm.xlu0 %3049, %v2543_v26  }
0x1f0b   :  { %2558 = vperm.xlu0 %3049, %v2544_v32  }
0x1f0f   :  { %2563 = vperm.xlu0 %3049, %v2545_v34  }
0x1f7e   :  { %v2549_v7 = vpop.permute.xlu0 %2548 }
0x1f7f   :  { %v2566_v56 = vmul.f32 %v2549_v7, %v3917_v13 }
0x1f81   :  { %v2570_v2 = vsel %vm438_vm6, %v2566_v56, 0.0 }
0x1f82   :  { %v2571_v10 = vrot.slane %v2570_v2, 4  ;;  %v2554_v45 = vpop.permute.xlu0 %2553 }
0x1f83   :  { %v2567_v58 = vmul.f32 %v2554_v45, %v3919_v55 }
0x1f84   :  { %v2572_v17 = vadd.f32 %v2571_v10, %v2570_v2 }
0x1f85   :  { %v2577_v37 = vsel %vm438_vm6, %v2567_v58, 0.0 }
0x1f86   :  { %v2573_v1 = vrot.slane %v2572_v17, 2  ;;  %v2578_v61 = vrot.slane %v2577_v37, 4  ;;  %v2559_v12 = vpop.permute.xlu0 %2558 }
0x1f87   :  { %v2568_v31 = vmul.f32 %v2559_v12, %v3921_v19 }
0x1f88   :  { %v2579_v48 = vadd.f32 %v2578_v61, %v2577_v37  ;;  %v2574_v54 = vadd.f32 %v2573_v1, %v2572_v17 }
0x1f89   :  { %v2584_v0 = vsel %vm438_vm6, %v2568_v31, 0.0 }
0x1f8a   :  { %v2580_v36 = vrot.slane %v2579_v48, 2  ;;  %v2585_v13 = vrot.slane %v2584_v0, 4  ;;  %v2564_v5 = vpop.permute.xlu0 %2563  ;;  %v2575_v52 = vrot.slane %v2574_v54, 1 }
0x1f8b   :  { %v2569_v14 = vmul.f32 %v2564_v5, %v3915_v50 }
0x1f8c   :  { %v2581_v6 = vadd.f32 %v2580_v36, %v2579_v48  ;;  %v2586_v40 = vadd.f32 %v2585_v13, %v2584_v0  ;;  %v2576_v41 = vadd.f32 %v2575_v52, %v2574_v54 }
0x1f8d   :  { %v2591_v55 = vsel %vm438_vm6, %v2569_v14, 0.0 }
0x1f8e   :  { %v2582_v18 = vrot.slane %v2581_v6, 1  ;;  %v2587_v39 = vrot.slane %v2586_v40, 2  ;;  %v2592_v9 = vrot.slane %v2591_v55, 4  ;;  %v2598_v24 = vpack.c.bf16 %v2576_v41, %v2576_v41 }
0x1f90   :  { %v2583_v43 = vadd.f32 %v2582_v18, %v2581_v6  ;;  %v2588_v46 = vadd.f32 %v2587_v39, %v2586_v40  ;;  %v2593_v19 = vadd.f32 %v2592_v9, %v2591_v55  ;;  %v2617_v11 = vunpack.c.l.b16 %v2598_v24 }
0x1f92   :  { %v2589_v47 = vrot.slane %v2588_v46, 1  ;;  %v2594_v60 = vrot.slane %v2593_v19, 2  ;;  %v2599_v51 = vpack.c.bf16 %v2583_v43, %v2583_v43 }
0x1f94   :  { %v2590_v53 = vadd.f32 %v2589_v47, %v2588_v46  ;;  %v2595_v57 = vadd.f32 %v2594_v60, %v2593_v19  ;;  %v2618_v44 = vunpack.c.l.b16 %v2599_v51 }
0x1f96   :  { %v2600_v27 = vpack.c.bf16 %v2590_v53, %v2590_v53  ;;  %v2596_v50 = vrot.slane %v2595_v57, 1  ;;  %v2621_v28 = vsel %vm2437_vm7, %v2618_v44, %v2617_v11 }
0x1f98   :  { %v2597_v33 = vadd.f32 %v2596_v50, %v2595_v57  ;;  %v2619_v35 = vunpack.c.l.b16 %v2600_v27 }
0x1f9a   :  { %v2601_v3 = vpack.c.bf16 %v2597_v33, %v2597_v33  ;;  %v2622_v15 = vsel %vm2439_vm8, %v2619_v35, %v2621_v28 }
0x1f9c   :  { %v2620_v4 = vunpack.c.l.b16 %v2601_v3 }
0x1f9e   :  { %v2623_v59 = vsel %vm2441_vm9, %v2620_v4, %v2622_v15 }
0x1f9f   :  { %v2624_v62 = vpack.c.b16 %v2623_v59, %v2623_v59 }
0x1fa1   :  { %3012 = vmatmul.mubr.msk.bf16.vlgmr.msra.gmra.mxu1 %vm438_vm6, %v2624_v62 }
0x2061   :  { %v2674_v20 = vpop.f32.mrf.mxu1 }
0x2062   :  { %v2675_v21 = vadd.f32 %v2755_v16, %v2674_v20 }
0x2063   :  { %v3013_v30 = vpop.f32.mrf.mxu1 }
0x2064   :  { %2681 = vst.msk [vmem:[#allocation11] sm:$0xf] %vm2680_vm11, %v2675_v21 }
0x2065   :  { %v2677_v8 = vpop.f32.mrf.mxu1 }
0x2066   :  { %3330 = shalt.err (!%p3327_p1)
}
0x2067   :  { %2691 = dma.vmem_to_hbm [thread:$0]  %s2689_s18, 64, %s3991_s11, [#allocation4]   ;;  %v3014_v22 = vpop.f32.mrf.mxu1 }
0x2068   :  { %3345 = dma.done.wait [#allocation4], 64  }
0x2069   :  { %3346 = vsyncadd [#allocation4], 4294967232 }
0x206a   :  { %2695 = vsyncpa [#allocation3], 1 }
0x206b   :  { %2696 = vsyncpa [#allocation6], 1 }
0x206c   :  { %2697 = vsyncpa [#allocation9], 1 }
0x206d   :  { %2698 = vsyncpa [#allocation4], 1 }

</bundles_post_ra>
